<compile_context>
chip_gen: v5e
topology: v5e:2x2
jax: 0.10.0
libtpu: 0.0.40
codegen_flags: <defaults>
</compile_context>

<pallas_src>
import functools

import jax
import jax.numpy as jnp
from jax import lax
from jax.experimental import pallas as pl
from jax.experimental.pallas import tpu as pltpu

_BN_EPS = 1e-5


# ------------------------------ small helpers ------------------------------ #

def _round_up(x, m):
    return (x + m - 1) // m * m


def _pick_tile(dim, preferred):
    """Largest preferred tile that divides dim (dim is a multiple of 128)."""
    for t in preferred:
        if dim % t == 0:
            return t
    return 128


# ----------------------------- Pallas kernels ------------------------------ #

def _matmul_bias_kernel(x_ref, w_ref, b_ref, o_ref, acc_ref, *, apply_relu):
    """Tiled matmul with K-accumulation; bias (+ReLU) applied on the last K step."""
    @pl.when(pl.program_id(2) == 0)
    def _init():
        acc_ref[...] = jnp.zeros_like(acc_ref)

    acc_ref[...] += jnp.dot(x_ref[...], w_ref[...],
                            preferred_element_type=jnp.float32)

    @pl.when(pl.program_id(2) == pl.num_programs(2) - 1)
    def _finalize():
        out = acc_ref[...] + b_ref[...]
        if apply_relu:
            out = jnp.maximum(out, 0.0)
        o_ref[...] = out.astype(o_ref.dtype)


def fused_matmul_bias(x2d, w, bias, *, apply_relu, out_dtype=jnp.float32):
    """out = [relu](x2d @ w + bias); x2d/w bf16, f32 accumulation.

    All dims must be multiples of 128 (padded in glue -> lane-dense stores).
    """
    M, K = x2d.shape
    K2, N = w.shape
    assert K == K2 and M % 128 == 0 and K % 128 == 0 and N % 128 == 0

    tm = _pick_tile(M, (1024, 512, 256, 128))
    tn = _pick_tile(N, (256, 128))
    tk = _pick_tile(K, (512, 256, 128))
    grid = (M // tm, N // tn, K // tk)

    kernel = functools.partial(_matmul_bias_kernel, apply_relu=apply_relu)
    return pl.pallas_call(
        kernel,
        out_shape=jax.ShapeDtypeStruct((M, N), out_dtype),
        grid_spec=pltpu.PrefetchScalarGridSpec(
            num_scalar_prefetch=0,
            grid=grid,
            in_specs=[
                pl.BlockSpec((tm, tk), lambda i, j, k: (i, k)),
                pl.BlockSpec((tk, tn), lambda i, j, k: (k, j)),
                pl.BlockSpec((1, tn), lambda i, j, k: (0, j)),
            ],
            out_specs=pl.BlockSpec((tm, tn), lambda i, j, k: (i, j)),
            scratch_shapes=[pltpu.VMEM((tm, tn), jnp.float32)],
        ),
        compiler_params=pltpu.CompilerParams(
            dimension_semantics=("parallel", "parallel", "arbitrary")),
    )(x2d, w, bias.reshape(1, N))


def _conv3x3_bias_relu_kernel(yp_ref, w_ref, b_ref, o_ref):
    """3x3 / stride 1 / pad 1 conv as 9 accumulated matmuls over a halo'd
    (padded) image tile held in VMEM. Bias + ReLU fused."""
    _, ho, wo, tn = o_ref.shape
    ck = yp_ref.shape[-1]
    acc = jnp.zeros((ho * wo, tn), jnp.float32)
    for t in range(9):                       # unrolled tap loop (static)
        dy, dx = divmod(t, 3)
        win = yp_ref[0, dy:dy + ho, dx:dx + wo, :]         # (ho, wo, ck)
        acc = acc + jnp.dot(win.reshape(ho * wo, ck), w_ref[t],
                            preferred_element_type=jnp.float32)
    out = jnp.maximum(acc + b_ref[...], 0.0)
    o_ref[0] = out.reshape(ho, wo, tn).astype(o_ref.dtype)


def fused_conv3x3_bias_relu(yp, w2, bias, *, out_dtype=jnp.bfloat16):
    """yp: (n, ho+2, wo+2, ck) spatially padded bf16 input (ck multiple of 128).
    w2: (9, ck, cn) bf16, BN-scale folded. bias: (cn,) f32."""
    n, hp, wp, ck = yp.shape
    ho, wo = hp - 2, wp - 2
    _, _, cn = w2.shape
    tn = _pick_tile(cn, (256, 128))
    grid = (n, cn // tn)

    return pl.pallas_call(
        _conv3x3_bias_relu_kernel,
        out_shape=jax.ShapeDtypeStruct((n, ho, wo, cn), out_dtype),
        grid_spec=pltpu.PrefetchScalarGridSpec(
            num_scalar_prefetch=0,
            grid=grid,
            in_specs=[
                # same padded image reused across all output-channel tiles
                pl.BlockSpec((1, hp, wp, ck), lambda b, j: (b, 0, 0, 0)),
                pl.BlockSpec((9, ck, tn), lambda b, j: (0, 0, j)),
                pl.BlockSpec((1, tn), lambda b, j: (0, j)),
            ],
            out_specs=pl.BlockSpec((1, ho, wo, tn), lambda b, j: (b, 0, 0, j)),
        ),
        compiler_params=pltpu.CompilerParams(
            dimension_semantics=("parallel", "parallel")),
    )(yp, w2, bias.reshape(1, cn))


# ------------------------------ JAX glue ----------------------------------- #

def _fold_bn(conv_b, gamma, beta, mean, var, eps=_BN_EPS):
    """Eval-mode BN folded to per-output-channel (scale, bias)."""
    scale = gamma / jnp.sqrt(var + eps)
    bias = (conv_b - mean) * scale + beta
    return scale, bias


def btnk1_forward(x_nchw, params, stride):
    # NCHW -> NHWC at the module boundary (required by the PyTorch interface).
    x = jnp.transpose(x_nchw, (0, 2, 3, 1)).astype(jnp.float32)
    n, h, w, c_in = x.shape
    c_mid = params["conv1_w"].shape[0]
    c_out = params["conv3_w"].shape[0]

    # strided spatial sampling shared by conv1 and the shortcut (1x1, stride s)
    xs = x[:, ::stride, ::stride, :]
    ho, wo = xs.shape[1], xs.shape[2]
    M = n * ho * wo

    # pad everything to lane-dense multiples of 128
    MP = _round_up(M, 128)
    KIN = _round_up(c_in, 128)
    CMID = _round_up(c_mid, 128)
    COUT = _round_up(c_out, 128)

    xs2d = jnp.pad(xs.reshape(M, c_in), ((0, MP - M), (0, KIN - c_in)))
    xs2d = xs2d.astype(jnp.bfloat16)

    # ---- weight / bias prep: fold BN scale into weight columns ----
    s1, b1 = _fold_bn(params["conv1_b"], *params["bn1"])
    s2, b2 = _fold_bn(params["conv2_b"], *params["bn2"])
    s3, b3 = _fold_bn(params["conv3_b"], *params["bn3"])
    ssc, bsc = _fold_bn(params["convsc_b"], *params["bnsc"])

    w1 = params["conv1_w"][:, :, 0, 0].T * s1[None, :]           # (c_in, c_mid)
    w1_p = jnp.pad(w1, ((0, KIN - c_in), (0, CMID - c_mid))).astype(jnp.bfloat16)
    b1_p = jnp.pad(b1, (0, CMID - c_mid))

    w2 = jnp.transpose(params["conv2_w"], (2, 3, 1, 0)).reshape(9, c_mid, c_mid)
    w2 = w2 * s2[None, None, :]                                   # (9, ci, co)
    w2_p = jnp.pad(w2, ((0, 0), (0, CMID - c_mid), (0, CMID - c_mid)))
    w2_p = w2_p.astype(jnp.bfloat16)
    b2_p = jnp.pad(b2, (0, CMID - c_mid))

    w3 = params["conv3_w"][:, :, 0, 0].T * s3[None, :]            # (c_mid, c_out)
    w3_p = jnp.pad(w3, ((0, CMID - c_mid), (0, COUT - c_out)))
    wsc = params["convsc_w"][:, :, 0, 0].T * ssc[None, :]         # (c_in, c_out)
    wsc_p = jnp.pad(wsc, ((0, KIN - c_in), (0, COUT - c_out)))
    # shortcut fused into conv3: concatenated-K weight, summed biases
    wcat = jnp.concatenate([w3_p, wsc_p], axis=0).astype(jnp.bfloat16)
    bcat = jnp.pad(b3, (0, COUT - c_out)) + jnp.pad(bsc, (0, COUT - c_out))

    # ---- conv1: 1x1 stride s + BN + ReLU ----
    y1 = fused_matmul_bias(xs2d, w1_p, b1_p, apply_relu=True,
                           out_dtype=jnp.bfloat16)                # (MP, CMID)
    y1 = y1[:M].reshape(n, ho, wo, CMID)

    # ---- conv2: 3x3 stride 1 pad 1 + BN + ReLU (no HBM im2col) ----
    yp = jnp.pad(y1, ((0, 0), (1, 1), (1, 1), (0, 0)))            # halo pad only
    y2 = fused_conv3x3_bias_relu(yp, w2_p, b2_p, out_dtype=jnp.bfloat16)
    y2_2d = jnp.pad(y2.reshape(M, CMID), ((0, MP - M), (0, 0)))

    # ---- conv3 + shortcut + final ReLU, fused into one tiled matmul ----
    xcat = jnp.concatenate([y2_2d, xs2d], axis=1)                 # (MP, CMID+KIN)
    out2d = fused_matmul_bias(xcat, wcat, bcat, apply_relu=True,
                              out_dtype=jnp.float32)              # (MP, COUT)

    out = out2d[:M, :c_out].reshape(n, ho, wo, c_out)
    return jnp.transpose(out, (0, 3, 1, 2))                       # NHWC -> NCHW


# ----------------------- deterministic parameter init ---------------------- #

def init_btnk1_params(key, c_in, c_out):
    c_mid = c_out // 4
    ks = iter(jax.random.split(key, 16))

    def conv(cout, cin, kh, kw):
        fan_in = cin * kh * kw
        bound = 1.0 / (fan_in ** 0.5)
        w_ = jax.random.uniform(next(ks), (cout, cin, kh, kw), jnp.float32, -bound, bound)
        b_ = jax.random.uniform(next(ks), (cout,), jnp.float32, -bound, bound)
        return w_, b_

    def bn(c):
        k1, k2, k3, k4 = jax.random.split(next(ks), 4)
        gamma = jax.random.uniform(k1, (c,), jnp.float32, 0.5, 1.5)
        beta = jax.random.uniform(k2, (c,), jnp.float32, -0.5, 0.5)
        mean = jax.random.uniform(k3, (c,), jnp.float32, -0.5, 0.5)
        var = jax.random.uniform(k4, (c,), jnp.float32, 0.5, 1.5)
        return gamma, beta, mean, var

    p = {}
    p["conv1_w"], p["conv1_b"] = conv(c_mid, c_in, 1, 1)
    p["bn1"] = bn(c_mid)
    p["conv2_w"], p["conv2_b"] = conv(c_mid, c_mid, 3, 3)
    p["bn2"] = bn(c_mid)
    p["conv3_w"], p["conv3_b"] = conv(c_out, c_mid, 1, 1)
    p["bn3"] = bn(c_out)
    p["convsc_w"], p["convsc_b"] = conv(c_out, c_in, 1, 1)
    p["bnsc"] = bn(c_out)
    return p


# ------------------------ pure-JAX (XLA) reference -------------------------- #

def _conv_nchw(x, w, b, stride, padding):
    y = lax.conv_general_dilated(
        x, w, (stride, stride), padding,
        dimension_numbers=("NCHW", "OIHW", "NCHW"))
    return y + b[None, :, None, None]


def _bn_nchw(x, gamma, beta, mean, var, eps=_BN_EPS):
    inv = gamma / jnp.sqrt(var + eps)
    return (x - mean[None, :, None, None]) * inv[None, :, None, None] \
        + beta[None, :, None, None]


def btnk1_reference(x, p, stride):
    y = _conv_nchw(x, p["conv1_w"], p["conv1_b"], stride, "VALID")
    y = jnp.maximum(_bn_nchw(y, *p["bn1"]), 0.0)
    y = _conv_nchw(y, p["conv2_w"], p["conv2_b"], 1, ((1, 1), (1, 1)))
    y = jnp.maximum(_bn_nchw(y, *p["bn2"]), 0.0)
    y = _conv_nchw(y, p["conv3_w"], p["conv3_b"], 1, "VALID")
    fx = _bn_nchw(y, *p["bn3"])
    sc = _conv_nchw(x, p["convsc_w"], p["convsc_b"], stride, "VALID")
    sc = _bn_nchw(sc, *p["bnsc"])
    return jnp.maximum(fx + sc, 0.0)


# --------------------------------- main ------------------------------------ #

if __name__ == "__main__":
    key = jax.random.PRNGKey(0)
    k_x, k_p = jax.random.split(key)

    batch, c_in, hw = 2, 4, 16
    c_out, stride = 16, 2

    x = jax.random.normal(k_x, (batch, c_in, hw, hw), jnp.float32)
    params = init_btnk1_params(k_p, c_in, c_out)

    fwd = jax.jit(btnk1_forward, static_argnums=2)
    out = jax.block_until_ready(fwd(x, params, stride))

    ref = jax.block_until_ready(btnk1_reference(x, params, stride))
    assert out.shape == (batch, c_out, hw // stride, hw // stride), out.shape
    # bf16 MXU path: compare with a mixed abs/rel tolerance against the f32 ref
    err = float(jnp.max(jnp.abs(out - ref) / (1.0 + jnp.abs(ref))))
    assert err < 1e-1, err

    print("KERNEL_OK")
</pallas_src>

<mosaic_0001>
module attributes {stable_mosaic.version = 11 : i64} {
  func.func @_matmul_bias_kernel(%arg0: i32, %arg1: i32, %arg2: i32, %arg3: memref<128x128xbf16, #tpu.memory_space<vmem>>, %arg4: memref<128x128xbf16, #tpu.memory_space<vmem>>, %arg5: memref<1x128xf32, #tpu.memory_space<vmem>>, %arg6: memref<128x128xbf16, #tpu.memory_space<vmem>>, %arg7: memref<128x128xf32, #tpu.memory_space<vmem>>) attributes {dimension_semantics = [#tpu.dimension_semantics<parallel>, #tpu.dimension_semantics<parallel>, #tpu.dimension_semantics<arbitrary>], iteration_bounds = array<i64: 1, 1, 1>, scalar_prefetch = 0 : i64, scratch_operands = 1 : i64, tpu.core_type = #tpu.core_type<tc>, window_params = [{transform_indices = @transform_0, window_bounds = array<i64: 128, 128>}, {transform_indices = @transform_1, window_bounds = array<i64: 128, 128>}, {transform_indices = @transform_2, window_bounds = array<i64: 1, 128>}, {transform_indices = @transform_3, window_bounds = array<i64: 128, 128>}]} {
    %c0_i32 = arith.constant 0 : i32
    %0 = arith.cmpi eq, %arg2, %c0_i32 : i32
    %1 = arith.extui %0 : i1 to i32
    %c0_i32_0 = arith.constant 0 : i32
    %2 = arith.cmpi ne, %1, %c0_i32_0 : i32
    scf.if %2 {
      %cst_10 = arith.constant 0.000000e+00 : f32
      %12 = vector.broadcast %cst_10 : f32 to vector<128x128xf32>
      %c0_11 = arith.constant 0 : index
      %c0_12 = arith.constant 0 : index
      %13 = vector.load %arg7[%c0_11, %c0_12] : memref<128x128xf32, #tpu.memory_space<vmem>>, vector<128x128xf32>
      tpu.vector_store %arg7[%c0_11, %c0_12], %12 {strides = array<i32>} : memref<128x128xf32, #tpu.memory_space<vmem>>, vector<128x128xf32>,
    } else {
    }
    %c0 = arith.constant 0 : index
    %c0_1 = arith.constant 0 : index
    %3 = vector.load %arg7[%c0, %c0_1] : memref<128x128xf32, #tpu.memory_space<vmem>>, vector<128x128xf32>
    %c0_2 = arith.constant 0 : index
    %c0_3 = arith.constant 0 : index
    %4 = vector.load %arg3[%c0_2, %c0_3] : memref<128x128xbf16, #tpu.memory_space<vmem>>, vector<128x128xbf16>
    %c0_4 = arith.constant 0 : index
    %c0_5 = arith.constant 0 : index
    %5 = vector.load %arg4[%c0_4, %c0_5] : memref<128x128xbf16, #tpu.memory_space<vmem>>, vector<128x128xbf16>
    %cst = arith.constant dense<0.000000e+00> : vector<128x128xf32>
    %6 = tpu.matmul %4, %5, %cst {dimension_numbers = #tpu.dot_dimension_numbers<[1], [0], [0], [1], [0, 0, 1, 1], [], []>} : vector<128x128xbf16>, vector<128x128xbf16>, vector<128x128xf32> -> vector<128x128xf32>
    %7 = arith.addf %3, %6 : vector<128x128xf32>
    %c0_6 = arith.constant 0 : index
    %c0_7 = arith.constant 0 : index
    %8 = vector.load %arg7[%c0_6, %c0_7] : memref<128x128xf32, #tpu.memory_space<vmem>>, vector<128x128xf32>
    tpu.vector_store %arg7[%c0_6, %c0_7], %7 {strides = array<i32>} : memref<128x128xf32, #tpu.memory_space<vmem>>, vector<128x128xf32>,
    %c0_i32_8 = arith.constant 0 : i32
    %9 = arith.cmpi eq, %arg2, %c0_i32_8 : i32
    %10 = arith.extui %9 : i1 to i32
    %c0_i32_9 = arith.constant 0 : i32
    %11 = arith.cmpi ne, %10, %c0_i32_9 : i32
    scf.if %11 {
      %c0_10 = arith.constant 0 : index
      %c0_11 = arith.constant 0 : index
      %12 = vector.load %arg7[%c0_10, %c0_11] : memref<128x128xf32, #tpu.memory_space<vmem>>, vector<128x128xf32>
      %c0_12 = arith.constant 0 : index
      %c0_13 = arith.constant 0 : index
      %13 = vector.load %arg5[%c0_12, %c0_13] : memref<1x128xf32, #tpu.memory_space<vmem>>, vector<1x128xf32>
      %14 = vector.broadcast %13 : vector<1x128xf32> to vector<128x128xf32>
      %15 = arith.addf %12, %14 : vector<128x128xf32>
      %cst_14 = arith.constant 0.000000e+00 : f32
      %16 = vector.broadcast %cst_14 : f32 to vector<128x128xf32>
      %17 = arith.maximumf %15, %16 : vector<128x128xf32>
      %18 = arith.truncf %17 : vector<128x128xf32> to vector<128x128xbf16>
      %c0_15 = arith.constant 0 : index
      %c0_16 = arith.constant 0 : index
      %19 = vector.load %arg6[%c0_15, %c0_16] : memref<128x128xbf16, #tpu.memory_space<vmem>>, vector<128x128xbf16>
      tpu.vector_store %arg6[%c0_15, %c0_16], %18 {strides = array<i32>} : memref<128x128xbf16, #tpu.memory_space<vmem>>, vector<128x128xbf16>,
    } else {
    }
    return
  }
  func.func @transform_0(%arg0: i32, %arg1: i32, %arg2: i32) -> (i32, i32) {
    %c0_i32 = arith.constant 0 : i32
    return %arg0, %arg2 : i32, i32
  }
  func.func @transform_1(%arg0: i32, %arg1: i32, %arg2: i32) -> (i32, i32) {
    %c0_i32 = arith.constant 0 : i32
    return %arg2, %arg1 : i32, i32
  }
  func.func @transform_2(%arg0: i32, %arg1: i32, %arg2: i32) -> (i32, i32) {
    %c0_i32 = arith.constant 0 : i32
    %c0_i32_0 = arith.constant 0 : i32
    return %c0_i32, %arg1 : i32, i32
  }
  func.func @transform_3(%arg0: i32, %arg1: i32, %arg2: i32) -> (i32, i32) {
    %c0_i32 = arith.constant 0 : i32
    return %arg0, %arg1 : i32, i32
  }
}

module attributes {stable_mosaic.version = 11 : i64} {
  func.func @_conv3x3_bias_relu_kernel(%arg0: i32, %arg1: i32, %arg2: memref<1x10x10x128xbf16, #tpu.memory_space<vmem>>, %arg3: memref<9x128x128xbf16, #tpu.memory_space<vmem>>, %arg4: memref<1x128xf32, #tpu.memory_space<vmem>>, %arg5: memref<1x8x8x128xbf16, #tpu.memory_space<vmem>>) attributes {dimension_semantics = [#tpu.dimension_semantics<parallel>, #tpu.dimension_semantics<parallel>], iteration_bounds = array<i64: 2, 1>, scalar_prefetch = 0 : i64, scratch_operands = 0 : i64, tpu.core_type = #tpu.core_type<tc>, window_params = [{transform_indices = @transform_0, window_bounds = array<i64: 1, 10, 10, 128>}, {transform_indices = @transform_1, window_bounds = array<i64: 9, 128, 128>}, {transform_indices = @transform_2, window_bounds = array<i64: 1, 128>}, {transform_indices = @transform_3, window_bounds = array<i64: 1, 8, 8, 128>}]} {
    %cst = arith.constant 0.000000e+00 : f32
    %0 = vector.broadcast %cst : f32 to vector<64x128xf32>
    %c0 = arith.constant 0 : index
    %c0_0 = arith.constant 0 : index
    %c0_1 = arith.constant 0 : index
    %c0_2 = arith.constant 0 : index
    %1 = vector.load %arg2[%c0, %c0_0, %c0_1, %c0_2] : memref<1x10x10x128xbf16, #tpu.memory_space<vmem>>, vector<1x8x8x128xbf16>
    %2 = vector.shape_cast %1 : vector<1x8x8x128xbf16> to vector<8x8x128xbf16>
    %3 = vector.shape_cast %2 : vector<8x8x128xbf16> to vector<64x128xbf16>
    %c0_3 = arith.constant 0 : index
    %c0_4 = arith.constant 0 : index
    %c0_5 = arith.constant 0 : index
    %4 = vector.load %arg3[%c0_3, %c0_4, %c0_5] : memref<9x128x128xbf16, #tpu.memory_space<vmem>>, vector<1x128x128xbf16>
    %5 = vector.shape_cast %4 : vector<1x128x128xbf16> to vector<128x128xbf16>
    %cst_6 = arith.constant dense<0.000000e+00> : vector<64x128xf32>
    %6 = tpu.matmul %3, %5, %cst_6 {dimension_numbers = #tpu.dot_dimension_numbers<[1], [0], [0], [1], [0, 0, 1, 1], [], []>} : vector<64x128xbf16>, vector<128x128xbf16>, vector<64x128xf32> -> vector<64x128xf32>
    %7 = arith.addf %0, %6 : vector<64x128xf32>
    %c0_7 = arith.constant 0 : index
    %c0_8 = arith.constant 0 : index
    %c1 = arith.constant 1 : index
    %c0_9 = arith.constant 0 : index
    %8 = vector.load %arg2[%c0_7, %c0_8, %c1, %c0_9] : memref<1x10x10x128xbf16, #tpu.memory_space<vmem>>, vector<1x8x8x128xbf16>
    %9 = vector.shape_cast %8 : vector<1x8x8x128xbf16> to vector<8x8x128xbf16>
    %10 = vector.shape_cast %9 : vector<8x8x128xbf16> to vector<64x128xbf16>
    %c1_10 = arith.constant 1 : index
    %c0_11 = arith.constant 0 : index
    %c0_12 = arith.constant 0 : index
    %11 = vector.load %arg3[%c1_10, %c0_11, %c0_12] : memref<9x128x128xbf16, #tpu.memory_space<vmem>>, vector<1x128x128xbf16>
    %12 = vector.shape_cast %11 : vector<1x128x128xbf16> to vector<128x128xbf16>
    %cst_13 = arith.constant dense<0.000000e+00> : vector<64x128xf32>
    %13 = tpu.matmul %10, %12, %cst_13 {dimension_numbers = #tpu.dot_dimension_numbers<[1], [0], [0], [1], [0, 0, 1, 1], [], []>} : vector<64x128xbf16>, vector<128x128xbf16>, vector<64x128xf32> -> vector<64x128xf32>
    %14 = arith.addf %7, %13 : vector<64x128xf32>
    %c0_14 = arith.constant 0 : index
    %c0_15 = arith.constant 0 : index
    %c2 = arith.constant 2 : index
    %c0_16 = arith.constant 0 : index
    %15 = vector.load %arg2[%c0_14, %c0_15, %c2, %c0_16] : memref<1x10x10x128xbf16, #tpu.memory_space<vmem>>, vector<1x8x8x128xbf16>
    %16 = vector.shape_cast %15 : vector<1x8x8x128xbf16> to vector<8x8x128xbf16>
    %17 = vector.shape_cast %16 : vector<8x8x128xbf16> to vector<64x128xbf16>
    %c2_17 = arith.constant 2 : index
    %c0_18 = arith.constant 0 : index
    %c0_19 = arith.constant 0 : index
    %18 = vector.load %arg3[%c2_17, %c0_18, %c0_19] : memref<9x128x128xbf16, #tpu.memory_space<vmem>>, vector<1x128x128xbf16>
    %19 = vector.shape_cast %18 : vector<1x128x128xbf16> to vector<128x128xbf16>
    %cst_20 = arith.constant dense<0.000000e+00> : vector<64x128xf32>
    %20 = tpu.matmul %17, %19, %cst_20 {dimension_numbers = #tpu.dot_dimension_numbers<[1], [0], [0], [1], [0, 0, 1, 1], [], []>} : vector<64x128xbf16>, vector<128x128xbf16>, vector<64x128xf32> -> vector<64x128xf32>
    %21 = arith.addf %14, %20 : vector<64x128xf32>
    %c0_21 = arith.constant 0 : index
    %c1_22 = arith.constant 1 : index
    %c0_23 = arith.constant 0 : index
    %c0_24 = arith.constant 0 : index
    %22 = vector.load %arg2[%c0_21, %c1_22, %c0_23, %c0_24] : memref<1x10x10x128xbf16, #tpu.memory_space<vmem>>, vector<1x8x8x128xbf16>
    %23 = vector.shape_cast %22 : vector<1x8x8x128xbf16> to vector<8x8x128xbf16>
    %24 = vector.shape_cast %23 : vector<8x8x128xbf16> to vector<64x128xbf16>
    %c3 = arith.constant 3 : index
    %c0_25 = arith.constant 0 : index
    %c0_26 = arith.constant 0 : index
    %25 = vector.load %arg3[%c3, %c0_25, %c0_26] : memref<9x128x128xbf16, #tpu.memory_space<vmem>>, vector<1x128x128xbf16>
    %26 = vector.shape_cast %25 : vector<1x128x128xbf16> to vector<128x128xbf16>
    %cst_27 = arith.constant dense<0.000000e+00> : vector<64x128xf32>
    %27 = tpu.matmul %24, %26, %cst_27 {dimension_numbers = #tpu.dot_dimension_numbers<[1], [0], [0], [1], [0, 0, 1, 1], [], []>} : vector<64x128xbf16>, vector<128x128xbf16>, vector<64x128xf32> -> vector<64x128xf32>
    %28 = arith.addf %21, %27 : vector<64x128xf32>
    %c0_28 = arith.constant 0 : index
    %c1_29 = arith.constant 1 : index
    %c1_30 = arith.constant 1 : index
    %c0_31 = arith.constant 0 : index
    %29 = vector.load %arg2[%c0_28, %c1_29, %c1_30, %c0_31] : memref<1x10x10x128xbf16, #tpu.memory_space<vmem>>, vector<1x8x8x128xbf16>
    %30 = vector.shape_cast %29 : vector<1x8x8x128xbf16> to vector<8x8x128xbf16>
    %31 = vector.shape_cast %30 : vector<8x8x128xbf16> to vector<64x128xbf16>
    %c4 = arith.constant 4 : index
    %c0_32 = arith.constant 0 : index
    %c0_33 = arith.constant 0 : index
    %32 = vector.load %arg3[%c4, %c0_32, %c0_33] : memref<9x128x128xbf16, #tpu.memory_space<vmem>>, vector<1x128x128xbf16>
    %33 = vector.shape_cast %32 : vector<1x128x128xbf16> to vector<128x128xbf16>
    %cst_34 = arith.constant dense<0.000000e+00> : vector<64x128xf32>
    %34 = tpu.matmul %31, %33, %cst_34 {dimension_numbers = #tpu.dot_dimension_numbers<[1], [0], [0], [1], [0, 0, 1, 1], [], []>} : vector<64x128xbf16>, vector<128x128xbf16>, vector<64x128xf32> -> vector<64x128xf32>
    %35 = arith.addf %28, %34 : vector<64x128xf32>
    %c0_35 = arith.constant 0 : index
    %c1_36 = arith.constant 1 : index
    %c2_37 = arith.constant 2 : index
    %c0_38 = arith.constant 0 : index
    %36 = vector.load %arg2[%c0_35, %c1_36, %c2_37, %c0_38] : memref<1x10x10x128xbf16, #tpu.memory_space<vmem>>, vector<1x8x8x128xbf16>
    %37 = vector.shape_cast %36 : vector<1x8x8x128xbf16> to vector<8x8x128xbf16>
    %38 = vector.shape_cast %37 : vector<8x8x128xbf16> to vector<64x128xbf16>
    %c5 = arith.constant 5 : index
    %c0_39 = arith.constant 0 : index
    %c0_40 = arith.constant 0 : index
    %39 = vector.load %arg3[%c5, %c0_39, %c0_40] : memref<9x128x128xbf16, #tpu.memory_space<vmem>>, vector<1x128x128xbf16>
    %40 = vector.shape_cast %39 : vector<1x128x128xbf16> to vector<128x128xbf16>
    %cst_41 = arith.constant dense<0.000000e+00> : vector<64x128xf32>
    %41 = tpu.matmul %38, %40, %cst_41 {dimension_numbers = #tpu.dot_dimension_numbers<[1], [0], [0], [1], [0, 0, 1, 1], [], []>} : vector<64x128xbf16>, vector<128x128xbf16>, vector<64x128xf32> -> vector<64x128xf32>
    %42 = arith.addf %35, %41 : vector<64x128xf32>
    %c0_42 = arith.constant 0 : index
    %c2_43 = arith.constant 2 : index
    %c0_44 = arith.constant 0 : index
    %c0_45 = arith.constant 0 : index
    %43 = vector.load %arg2[%c0_42, %c2_43, %c0_44, %c0_45] : memref<1x10x10x128xbf16, #tpu.memory_space<vmem>>, vector<1x8x8x128xbf16>
    %44 = vector.shape_cast %43 : vector<1x8x8x128xbf16> to vector<8x8x128xbf16>
    %45 = vector.shape_cast %44 : vector<8x8x128xbf16> to vector<64x128xbf16>
    %c6 = arith.constant 6 : index
    %c0_46 = arith.constant 0 : index
    %c0_47 = arith.constant 0 : index
    %46 = vector.load %arg3[%c6, %c0_46, %c0_47] : memref<9x128x128xbf16, #tpu.memory_space<vmem>>, vector<1x128x128xbf16>
    %47 = vector.shape_cast %46 : vector<1x128x128xbf16> to vector<128x128xbf16>
    %cst_48 = arith.constant dense<0.000000e+00> : vector<64x128xf32>
    %48 = tpu.matmul %45, %47, %cst_48 {dimension_numbers = #tpu.dot_dimension_numbers<[1], [0], [0], [1], [0, 0, 1, 1], [], []>} : vector<64x128xbf16>, vector<128x128xbf16>, vector<64x128xf32> -> vector<64x128xf32>
    %49 = arith.addf %42, %48 : vector<64x128xf32>
    %c0_49 = arith.constant 0 : index
    %c2_50 = arith.constant 2 : index
    %c1_51 = arith.constant 1 : index
    %c0_52 = arith.constant 0 : index
    %50 = vector.load %arg2[%c0_49, %c2_50, %c1_51, %c0_52] : memref<1x10x10x128xbf16, #tpu.memory_space<vmem>>, vector<1x8x8x128xbf16>
    %51 = vector.shape_cast %50 : vector<1x8x8x128xbf16> to vector<8x8x128xbf16>
    %52 = vector.shape_cast %51 : vector<8x8x128xbf16> to vector<64x128xbf16>
    %c7 = arith.constant 7 : index
    %c0_53 = arith.constant 0 : index
    %c0_54 = arith.constant 0 : index
    %53 = vector.load %arg3[%c7, %c0_53, %c0_54] : memref<9x128x128xbf16, #tpu.memory_space<vmem>>, vector<1x128x128xbf16>
    %54 = vector.shape_cast %53 : vector<1x128x128xbf16> to vector<128x128xbf16>
    %cst_55 = arith.constant dense<0.000000e+00> : vector<64x128xf32>
    %55 = tpu.matmul %52, %54, %cst_55 {dimension_numbers = #tpu.dot_dimension_numbers<[1], [0], [0], [1], [0, 0, 1, 1], [], []>} : vector<64x128xbf16>, vector<128x128xbf16>, vector<64x128xf32> -> vector<64x128xf32>
    %56 = arith.addf %49, %55 : vector<64x128xf32>
    %c0_56 = arith.constant 0 : index
    %c2_57 = arith.constant 2 : index
    %c2_58 = arith.constant 2 : index
    %c0_59 = arith.constant 0 : index
    %57 = vector.load %arg2[%c0_56, %c2_57, %c2_58, %c0_59] : memref<1x10x10x128xbf16, #tpu.memory_space<vmem>>, vector<1x8x8x128xbf16>
    %58 = vector.shape_cast %57 : vector<1x8x8x128xbf16> to vector<8x8x128xbf16>
    %59 = vector.shape_cast %58 : vector<8x8x128xbf16> to vector<64x128xbf16>
    %c8 = arith.constant 8 : index
    %c0_60 = arith.constant 0 : index
    %c0_61 = arith.constant 0 : index
    %60 = vector.load %arg3[%c8, %c0_60, %c0_61] : memref<9x128x128xbf16, #tpu.memory_space<vmem>>, vector<1x128x128xbf16>
    %61 = vector.shape_cast %60 : vector<1x128x128xbf16> to vector<128x128xbf16>
    %cst_62 = arith.constant dense<0.000000e+00> : vector<64x128xf32>
    %62 = tpu.matmul %59, %61, %cst_62 {dimension_numbers = #tpu.dot_dimension_numbers<[1], [0], [0], [1], [0, 0, 1, 1], [], []>} : vector<64x128xbf16>, vector<128x128xbf16>, vector<64x128xf32> -> vector<64x128xf32>
    %63 = arith.addf %56, %62 : vector<64x128xf32>
    %c0_63 = arith.constant 0 : index
    %c0_64 = arith.constant 0 : index
    %64 = vector.load %arg4[%c0_63, %c0_64] : memref<1x128xf32, #tpu.memory_space<vmem>>, vector<1x128xf32>
    %65 = vector.broadcast %64 : vector<1x128xf32> to vector<64x128xf32>
    %66 = arith.addf %63, %65 : vector<64x128xf32>
    %cst_65 = arith.constant 0.000000e+00 : f32
    %67 = vector.broadcast %cst_65 : f32 to vector<64x128xf32>
    %68 = arith.maximumf %66, %67 : vector<64x128xf32>
    %69 = vector.shape_cast %68 : vector<64x128xf32> to vector<8x8x128xf32>
    %70 = arith.truncf %69 : vector<8x8x128xf32> to vector<8x8x128xbf16>
    %c0_66 = arith.constant 0 : index
    %c0_67 = arith.constant 0 : index
    %c0_68 = arith.constant 0 : index
    %c0_69 = arith.constant 0 : index
    %71 = vector.load %arg5[%c0_66, %c0_67, %c0_68, %c0_69] : memref<1x8x8x128xbf16, #tpu.memory_space<vmem>>, vector<1x8x8x128xbf16>
    %72 = vector.shape_cast %71 : vector<1x8x8x128xbf16> to vector<8x8x128xbf16>
    %73 = vector.shape_cast %70 : vector<8x8x128xbf16> to vector<1x8x8x128xbf16>
    tpu.vector_store %arg5[%c0_66, %c0_67, %c0_68, %c0_69], %73 {strides = array<i32>} : memref<1x8x8x128xbf16, #tpu.memory_space<vmem>>, vector<1x8x8x128xbf16>,
    return
  }
  func.func @transform_0(%arg0: i32, %arg1: i32) -> (i32, i32, i32, i32) {
    %c0_i32 = arith.constant 0 : i32
    %c0_i32_0 = arith.constant 0 : i32
    %c0_i32_1 = arith.constant 0 : i32
    %c0_i32_2 = arith.constant 0 : i32
    return %arg0, %c0_i32, %c0_i32_0, %c0_i32_1 : i32, i32, i32, i32
  }
  func.func @transform_1(%arg0: i32, %arg1: i32) -> (i32, i32, i32) {
    %c0_i32 = arith.constant 0 : i32
    %c0_i32_0 = arith.constant 0 : i32
    %c0_i32_1 = arith.constant 0 : i32
    return %c0_i32, %c0_i32_0, %arg1 : i32, i32, i32
  }
  func.func @transform_2(%arg0: i32, %arg1: i32) -> (i32, i32) {
    %c0_i32 = arith.constant 0 : i32
    %c0_i32_0 = arith.constant 0 : i32
    return %c0_i32, %arg1 : i32, i32
  }
  func.func @transform_3(%arg0: i32, %arg1: i32) -> (i32, i32, i32, i32) {
    %c0_i32 = arith.constant 0 : i32
    %c0_i32_0 = arith.constant 0 : i32
    %c0_i32_1 = arith.constant 0 : i32
    return %arg0, %c0_i32, %c0_i32_0, %arg1 : i32, i32, i32, i32
  }
}

module attributes {stable_mosaic.version = 11 : i64} {
  func.func @_matmul_bias_kernel(%arg0: i32, %arg1: i32, %arg2: i32, %arg3: memref<128x256xbf16, #tpu.memory_space<vmem>>, %arg4: memref<256x128xbf16, #tpu.memory_space<vmem>>, %arg5: memref<1x128xf32, #tpu.memory_space<vmem>>, %arg6: memref<128x128xf32, #tpu.memory_space<vmem>>, %arg7: memref<128x128xf32, #tpu.memory_space<vmem>>) attributes {dimension_semantics = [#tpu.dimension_semantics<parallel>, #tpu.dimension_semantics<parallel>, #tpu.dimension_semantics<arbitrary>], iteration_bounds = array<i64: 1, 1, 1>, scalar_prefetch = 0 : i64, scratch_operands = 1 : i64, tpu.core_type = #tpu.core_type<tc>, window_params = [{transform_indices = @transform_0, window_bounds = array<i64: 128, 256>}, {transform_indices = @transform_1, window_bounds = array<i64: 256, 128>}, {transform_indices = @transform_2, window_bounds = array<i64: 1, 128>}, {transform_indices = @transform_3, window_bounds = array<i64: 128, 128>}]} {
    %c0_i32 = arith.constant 0 : i32
    %0 = arith.cmpi eq, %arg2, %c0_i32 : i32
    %1 = arith.extui %0 : i1 to i32
    %c0_i32_0 = arith.constant 0 : i32
    %2 = arith.cmpi ne, %1, %c0_i32_0 : i32
    scf.if %2 {
      %cst_10 = arith.constant 0.000000e+00 : f32
      %12 = vector.broadcast %cst_10 : f32 to vector<128x128xf32>
      %c0_11 = arith.constant 0 : index
      %c0_12 = arith.constant 0 : index
      %13 = vector.load %arg7[%c0_11, %c0_12] : memref<128x128xf32, #tpu.memory_space<vmem>>, vector<128x128xf32>
      tpu.vector_store %arg7[%c0_11, %c0_12], %12 {strides = array<i32>} : memref<128x128xf32, #tpu.memory_space<vmem>>, vector<128x128xf32>,
    } else {
    }
    %c0 = arith.constant 0 : index
    %c0_1 = arith.constant 0 : index
    %3 = vector.load %arg7[%c0, %c0_1] : memref<128x128xf32, #tpu.memory_space<vmem>>, vector<128x128xf32>
    %c0_2 = arith.constant 0 : index
    %c0_3 = arith.constant 0 : index
    %4 = vector.load %arg3[%c0_2, %c0_3] : memref<128x256xbf16, #tpu.memory_space<vmem>>, vector<128x256xbf16>
    %c0_4 = arith.constant 0 : index
    %c0_5 = arith.constant 0 : index
    %5 = vector.load %arg4[%c0_4, %c0_5] : memref<256x128xbf16, #tpu.memory_space<vmem>>, vector<256x128xbf16>
    %cst = arith.constant dense<0.000000e+00> : vector<128x128xf32>
    %6 = tpu.matmul %4, %5, %cst {dimension_numbers = #tpu.dot_dimension_numbers<[1], [0], [0], [1], [0, 0, 1, 1], [], []>} : vector<128x256xbf16>, vector<256x128xbf16>, vector<128x128xf32> -> vector<128x128xf32>
    %7 = arith.addf %3, %6 : vector<128x128xf32>
    %c0_6 = arith.constant 0 : index
    %c0_7 = arith.constant 0 : index
    %8 = vector.load %arg7[%c0_6, %c0_7] : memref<128x128xf32, #tpu.memory_space<vmem>>, vector<128x128xf32>
    tpu.vector_store %arg7[%c0_6, %c0_7], %7 {strides = array<i32>} : memref<128x128xf32, #tpu.memory_space<vmem>>, vector<128x128xf32>,
    %c0_i32_8 = arith.constant 0 : i32
    %9 = arith.cmpi eq, %arg2, %c0_i32_8 : i32
    %10 = arith.extui %9 : i1 to i32
    %c0_i32_9 = arith.constant 0 : i32
    %11 = arith.cmpi ne, %10, %c0_i32_9 : i32
    scf.if %11 {
      %c0_10 = arith.constant 0 : index
      %c0_11 = arith.constant 0 : index
      %12 = vector.load %arg7[%c0_10, %c0_11] : memref<128x128xf32, #tpu.memory_space<vmem>>, vector<128x128xf32>
      %c0_12 = arith.constant 0 : index
      %c0_13 = arith.constant 0 : index
      %13 = vector.load %arg5[%c0_12, %c0_13] : memref<1x128xf32, #tpu.memory_space<vmem>>, vector<1x128xf32>
      %14 = vector.broadcast %13 : vector<1x128xf32> to vector<128x128xf32>
      %15 = arith.addf %12, %14 : vector<128x128xf32>
      %cst_14 = arith.constant 0.000000e+00 : f32
      %16 = vector.broadcast %cst_14 : f32 to vector<128x128xf32>
      %17 = arith.maximumf %15, %16 : vector<128x128xf32>
      %c0_15 = arith.constant 0 : index
      %c0_16 = arith.constant 0 : index
      %18 = vector.load %arg6[%c0_15, %c0_16] : memref<128x128xf32, #tpu.memory_space<vmem>>, vector<128x128xf32>
      tpu.vector_store %arg6[%c0_15, %c0_16], %17 {strides = array<i32>} : memref<128x128xf32, #tpu.memory_space<vmem>>, vector<128x128xf32>,
    } else {
    }
    return
  }
  func.func @transform_0(%arg0: i32, %arg1: i32, %arg2: i32) -> (i32, i32) {
    %c0_i32 = arith.constant 0 : i32
    return %arg0, %arg2 : i32, i32
  }
  func.func @transform_1(%arg0: i32, %arg1: i32, %arg2: i32) -> (i32, i32) {
    %c0_i32 = arith.constant 0 : i32
    return %arg2, %arg1 : i32, i32
  }
  func.func @transform_2(%arg0: i32, %arg1: i32, %arg2: i32) -> (i32, i32) {
    %c0_i32 = arith.constant 0 : i32
    %c0_i32_0 = arith.constant 0 : i32
    return %c0_i32, %arg1 : i32, i32
  }
  func.func @transform_3(%arg0: i32, %arg1: i32, %arg2: i32) -> (i32, i32) {
    %c0_i32 = arith.constant 0 : i32
    return %arg0, %arg1 : i32, i32
  }
}

</mosaic_0001>

<bundles_post_ra>
// kernel: btnk1_forward.3
= control target key start
LH: loop header
LB: loop body
LE: loop exit
PB: predicated region body
PF: predicated region fallthrough
CT: control target
= control target key end

     0   :  { %s597_s1 = inlined_call_operand.vmem [shape: bf16[128,128], index: 1, kind: input, shape index: {}]   ;;  %s598_s2 = inlined_call_operand.vmem [shape: f32[1,128], index: 2, kind: input, shape index: {}]   ;;  %s599_s0 = inlined_call_operand.vmem [shape: bf16[128,128], index: 0, kind: input, shape index: {}]   ;;  %s600_s3 = inlined_call_operand.vmem [shape: bf16[128,128], index: 3, kind: output, shape index: {}]  }
   0x1   :  { %v429_v0 = vld [vmem:[%s597_s1 + $0x38] sm:$0xff]  ;;  %v428_v1 = vld [vmem:[%s597_s1 + $0x30] sm:$0xff]  ;;  %v427_v2 = vld [vmem:[%s597_s1 + $0x28] sm:$0xff] }
   0x2   :  { %178 = vmatpush.bf16.msra.mxu0 %v429_v0  ;;  %477 = vmatpush.bf16.msra.mxu1 %v429_v0  ;;  %v426_v3 = vld [vmem:[%s597_s1 + $0x20] sm:$0xff]  ;;  %v425_v4 = vld [vmem:[%s597_s1 + $0x18] sm:$0xff]  ;;  %v424_v5 = vld [vmem:[%s597_s1 + $0x10] sm:$0xff] }
   0x3   :  { %478 = vmatpush.bf16.msra.mxu2 %v429_v0  ;;  %479 = vmatpush.bf16.msra.mxu3 %v429_v0  ;;  %v423_v6 = vld [vmem:[%s597_s1 + $0x8] sm:$0xff]  ;;  %v422_v7 = vld [vmem:[%s597_s1] sm:$0xff]  ;;  %v416_v9 = vld [vmem:[%s599_s0 + $0x10] sm:$0xff] }
   0x4   :  { %v414_v8 = vld [vmem:[%s599_s0] sm:$0xff]  ;;  %v420_v11 = vld [vmem:[%s599_s0 + $0x30] sm:$0xff]  ;;  %v415_v12 = vld [vmem:[%s599_s0 + $0x8] sm:$0xff] }
   0x5   :  { %v418_v10 = vld [vmem:[%s599_s0 + $0x20] sm:$0xff]  ;;  %v417_v13 = vld [vmem:[%s599_s0 + $0x18] sm:$0xff]  ;;  %v419_v14 = vld [vmem:[%s599_s0 + $0x28] sm:$0xff] }
   0x6   :  { %179 = vmatpush.bf16.msra.mxu0 %v428_v1  ;;  %480 = vmatpush.bf16.msra.mxu1 %v428_v1  ;;  %v421_v15 = vld [vmem:[%s599_s0 + $0x38] sm:$0xff]  ;;  %v501_v18 = vld [vmem:[%s598_s2] ss:$0 sm:$0xff] }
   0x7   :  { %481 = vmatpush.bf16.msra.mxu2 %v428_v1  ;;  %482 = vmatpush.bf16.msra.mxu3 %v428_v1 }
   0xa   :  { %180 = vmatpush.bf16.msra.mxu0 %v427_v2  ;;  %483 = vmatpush.bf16.msra.mxu1 %v427_v2 }
   0xb   :  { %484 = vmatpush.bf16.msra.mxu2 %v427_v2  ;;  %485 = vmatpush.bf16.msra.mxu3 %v427_v2 }
   0xe   :  { %181 = vmatpush.bf16.msra.mxu0 %v426_v3  ;;  %486 = vmatpush.bf16.msra.mxu1 %v426_v3 }
   0xf   :  { %487 = vmatpush.bf16.msra.mxu2 %v426_v3  ;;  %488 = vmatpush.bf16.msra.mxu3 %v426_v3 }
  0x12   :  { %182 = vmatpush.bf16.msra.mxu0 %v425_v4  ;;  %489 = vmatpush.bf16.msra.mxu1 %v425_v4 }
  0x13   :  { %490 = vmatpush.bf16.msra.mxu2 %v425_v4  ;;  %491 = vmatpush.bf16.msra.mxu3 %v425_v4 }
  0x16   :  { %183 = vmatpush.bf16.msra.mxu0 %v424_v5  ;;  %492 = vmatpush.bf16.msra.mxu1 %v424_v5 }
  0x17   :  { %493 = vmatpush.bf16.msra.mxu2 %v424_v5  ;;  %494 = vmatpush.bf16.msra.mxu3 %v424_v5 }
  0x1a   :  { %184 = vmatpush.bf16.msra.mxu0 %v423_v6  ;;  %495 = vmatpush.bf16.msra.mxu1 %v423_v6 }
  0x1b   :  { %496 = vmatpush.bf16.msra.mxu2 %v423_v6  ;;  %497 = vmatpush.bf16.msra.mxu3 %v423_v6 }
  0x1e   :  { %185 = vmatpush.bf16.msra.mxu0 %v422_v7  ;;  %498 = vmatpush.bf16.msra.mxu1 %v422_v7 }
  0x1f   :  { %499 = vmatpush.bf16.msra.mxu2 %v422_v7  ;;  %500 = vmatpush.bf16.msra.mxu3 %v422_v7 }
  0x21   :  { %186 = vmatmul.bf16.vlgmr.msra.gmra.mxu0 %v414_v8  ;;  %196 = vmatmul.bf16.vlgmr.msra.gmra.mxu1 %v416_v9 }
  0x22   :  { %206 = vmatmul.bf16.vlgmr.msra.gmra.mxu2 %v418_v10  ;;  %216 = vmatmul.bf16.vlgmr.msra.gmra.mxu3 %v420_v11 }
  0x31   :  { %191 = vmatmul.bf16.gmra.mxu0 %v415_v12  ;;  %201 = vmatmul.bf16.gmra.mxu1 %v417_v13 }
  0x32   :  { %211 = vmatmul.bf16.gmra.mxu2 %v419_v14  ;;  %221 = vmatmul.bf16.gmra.mxu3 %v421_v15 }
  0x9e   :  { %v187_v16 = vpop.f32.mrf.mxu0  ;;  %v197_v17 = vpop.f32.mrf.mxu1 }
  0x9f   :  { %v282_v19 = vadd.f32 %v501_v18, %v187_v16  ;;  %v286_v20 = vadd.f32 %v501_v18, %v197_v17 }
  0xa1   :  { %v298_v27 = vmax.f32 %v282_v19, 0.0  ;;  %v302_v28 = vmax.f32 %v286_v20, 0.0 }
  0xa5   :  { %v207_v21 = vpop.f32.mrf.mxu2  ;;  %v217_v22 = vpop.f32.mrf.mxu3 }
  0xa6   :  { %v189_v23 = vpop.f32.mrf.mxu0  ;;  %v199_v24 = vpop.f32.mrf.mxu1  ;;  %v290_v33 = vadd.f32 %v501_v18, %v207_v21  ;;  %v294_v34 = vadd.f32 %v501_v18, %v217_v22 }
  0xa7   :  { %v283_v25 = vadd.f32 %v501_v18, %v189_v23  ;;  %v287_v26 = vadd.f32 %v501_v18, %v199_v24 }
  0xa8   :  { %v306_v41 = vmax.f32 %v290_v33, 0.0  ;;  %v310_v42 = vmax.f32 %v294_v34, 0.0 }
  0xa9   :  { %v299_v29 = vmax.f32 %v283_v25, 0.0  ;;  %v303_v30 = vmax.f32 %v287_v26, 0.0 }
  0xab   :  { %v433_v31 = vpack.c.bf16 %v299_v29, %v298_v27  ;;  %v443_v32 = vpack.c.bf16 %v303_v30, %v302_v28 }
  0xad   :  { %434 = vst [vmem:[%s600_s3] sm:$0xff] %v433_v31   ;;  %v209_v35 = vpop.f32.mrf.mxu2  ;;  %v219_v36 = vpop.f32.mrf.mxu3 }
  0xae   :  { %471 = vst [vmem:[%s600_s3 + $0x10] sm:$0xff] %v443_v32   ;;  %v291_v37 = vadd.f32 %v501_v18, %v209_v35  ;;  %v295_v38 = vadd.f32 %v501_v18, %v219_v36  ;;  %v192_v39 = vpop.f32.mrf.mxu0  ;;  %v202_v40 = vpop.f32.mrf.mxu1 }
  0xaf   :  { %v284_v47 = vadd.f32 %v501_v18, %v192_v39  ;;  %v288_v48 = vadd.f32 %v501_v18, %v202_v40 }
  0xb0   :  { %v307_v43 = vmax.f32 %v291_v37, 0.0  ;;  %v311_v44 = vmax.f32 %v295_v38, 0.0 }
  0xb1   :  { %v300_v55 = vmax.f32 %v284_v47, 0.0  ;;  %v304_v56 = vmax.f32 %v288_v48, 0.0 }
  0xb2   :  { %v453_v45 = vpack.c.bf16 %v307_v43, %v306_v41  ;;  %v463_v46 = vpack.c.bf16 %v311_v44, %v310_v42 }
  0xb4   :  { %473 = vst [vmem:[%s600_s3 + $0x20] sm:$0xff] %v453_v45  }
  0xb5   :  { %475 = vst [vmem:[%s600_s3 + $0x30] sm:$0xff] %v463_v46   ;;  %v212_v49 = vpop.f32.mrf.mxu2  ;;  %v222_v50 = vpop.f32.mrf.mxu3 }
  0xb6   :  { %v194_v51 = vpop.f32.mrf.mxu0  ;;  %v204_v52 = vpop.f32.mrf.mxu1  ;;  %v292_v61 = vadd.f32 %v501_v18, %v212_v49  ;;  %v296_v62 = vadd.f32 %v501_v18, %v222_v50 }
  0xb7   :  { %v285_v53 = vadd.f32 %v501_v18, %v194_v51  ;;  %v289_v54 = vadd.f32 %v501_v18, %v204_v52 }
  0xb8   :  { %v308_v3 = vmax.f32 %v292_v61, 0.0  ;;  %v312_v4 = vmax.f32 %v296_v62, 0.0 }
  0xb9   :  { %v301_v57 = vmax.f32 %v285_v53, 0.0  ;;  %v305_v58 = vmax.f32 %v289_v54, 0.0 }
  0xbb   :  { %v438_v59 = vpack.c.bf16 %v301_v57, %v300_v55  ;;  %v448_v60 = vpack.c.bf16 %v305_v58, %v304_v56 }
  0xbd   :  { %470 = vst [vmem:[%s600_s3 + $0x8] sm:$0xff] %v438_v59   ;;  %v214_v63 = vpop.f32.mrf.mxu2  ;;  %v224_v0 = vpop.f32.mrf.mxu3 }
  0xbe   :  { %472 = vst [vmem:[%s600_s3 + $0x18] sm:$0xff] %v448_v60   ;;  %v293_v1 = vadd.f32 %v501_v18, %v214_v63  ;;  %v297_v2 = vadd.f32 %v501_v18, %v224_v0 }
  0xc0   :  { %v309_v5 = vmax.f32 %v293_v1, 0.0  ;;  %v313_v6 = vmax.f32 %v297_v2, 0.0 }
  0xc2   :  { %v458_v7 = vpack.c.bf16 %v309_v5, %v308_v3  ;;  %v468_v8 = vpack.c.bf16 %v313_v6, %v312_v4 }
  0xc4   :  { %474 = vst [vmem:[%s600_s3 + $0x28] sm:$0xff] %v458_v7  }
  0xc5   :  { %476 = vst [vmem:[%s600_s3 + $0x38] sm:$0xff] %v468_v8  }

// kernel: btnk1_forward.5
= control target key start
LH: loop header
LB: loop body
LE: loop exit
PB: predicated region body
PF: predicated region fallthrough
CT: control target
= control target key end

     0   :  { %s891_s0 = inlined_call_operand.vmem [shape: bf16[128,256], index: 0, kind: input, shape index: {}]   ;;  %s892_s1 = inlined_call_operand.vmem [shape: bf16[256,128], index: 1, kind: input, shape index: {}]   ;;  %s893_s2 = inlined_call_operand.vmem [shape: f32[1,128], index: 2, kind: input, shape index: {}]   ;;  %s894_s3 = inlined_call_operand.hbm [shape: f32[128,128], index: 3, kind: output, shape index: {}]  }
   0x1   :  { %v645_v0 = vld [vmem:[%s892_s1 + $0x38] sm:$0xff]  ;;  %v644_v2 = vld [vmem:[%s892_s1 + $0x30] sm:$0xff]  ;;  %v643_v4 = vld [vmem:[%s892_s1 + $0x28] sm:$0xff] }
   0x2   :  { %v653_v1 = vld [vmem:[%s892_s1 + $0x78] sm:$0xff]  ;;  %275 = vmatpush.bf16.msra.mxu0 %v645_v0  ;;  %654 = vmatpush.bf16.msra.mxu2 %v645_v0  ;;  %v652_v3 = vld [vmem:[%s892_s1 + $0x70] sm:$0xff]  ;;  %v651_v5 = vld [vmem:[%s892_s1 + $0x68] sm:$0xff] }
   0x3   :  { %324 = vmatpush.bf16.msra.mxu1 %v653_v1  ;;  %662 = vmatpush.bf16.msra.mxu3 %v653_v1 }
   0x6   :  { %276 = vmatpush.bf16.msra.mxu0 %v644_v2  ;;  %655 = vmatpush.bf16.msra.mxu2 %v644_v2 }
   0x7   :  { %325 = vmatpush.bf16.msra.mxu1 %v652_v3  ;;  %663 = vmatpush.bf16.msra.mxu3 %v652_v3 }
   0x8   :  { %8 = vsyncpa [#allocation4], 0  ;;  %v642_v6 = vld [vmem:[%s892_s1 + $0x20] sm:$0xff]  ;;  %v641_v8 = vld [vmem:[%s892_s1 + $0x18] sm:$0xff]  ;;  %s482_s28 = sshll.u32 %s894_s3, 4  ;;  %s701_s29 = smov 128   ;;  %s483_s28 = int_to_ptr.hbm [resolvable:$true] %s482_s28 }
   0x9   :  { %v650_v7 = vld [vmem:[%s892_s1 + $0x60] sm:$0xff]  ;;  %v649_v9 = vld [vmem:[%s892_s1 + $0x58] sm:$0xff]  ;;  %v640_v10 = vld [vmem:[%s892_s1 + $0x10] sm:$0xff]  ;;  %s702_s30 = smov 8  }
   0xa   :  { %277 = vmatpush.bf16.msra.mxu0 %v643_v4  ;;  %656 = vmatpush.bf16.msra.mxu2 %v643_v4  ;;  %v648_v11 = vld [vmem:[%s892_s1 + $0x50] sm:$0xff]  ;;  %v639_v12 = vld [vmem:[%s892_s1 + $0x8] sm:$0xff]  ;;  %v638_v14 = vld [vmem:[%s892_s1] sm:$0xff] }
   0xb   :  { %326 = vmatpush.bf16.msra.mxu1 %v651_v5  ;;  %664 = vmatpush.bf16.msra.mxu3 %v651_v5  ;;  %v647_v13 = vld [vmem:[%s892_s1 + $0x48] sm:$0xff]  ;;  %v646_v15 = vld [vmem:[%s892_s1 + $0x40] sm:$0xff]  ;;  %v504_v28 = vld [vmem:[%s891_s0 + $0x10] sm:$0xf] }
   0xc   :  { %v496_v16 = vld [vmem:[%s891_s0] sm:$0xf]  ;;  %v623_v17 = vld [vmem:[%s891_s0 + $0x4] sm:$0xf0]  ;;  %v622_v20 = vld [vmem:[%s891_s0 + $0x4] sm:$0xf] }
   0xd   :  { %v528_v18 = vld [vmem:[%s891_s0 + $0x40] sm:$0xf]  ;;  %v631_v19 = vld [vmem:[%s891_s0 + $0x44] sm:$0xf0]  ;;  %v498_v21 = vld [vmem:[%s891_s0 + $0x8] sm:$0xf0]  ;;  %v497_v24 = vor.u32 %v623_v17, %v496_v16 }
   0xe   :  { %278 = vmatpush.bf16.msra.mxu0 %v642_v6  ;;  %657 = vmatpush.bf16.msra.mxu2 %v642_v6  ;;  %v630_v22 = vld [vmem:[%s891_s0 + $0x44] sm:$0xf]  ;;  %v530_v23 = vld [vmem:[%s891_s0 + $0x48] sm:$0xf0]  ;;  %v529_v25 = vor.u32 %v631_v19, %v528_v18  ;;  %v501_v26 = vor.u32 %v622_v20, %v498_v21  ;;  %v625_v29 = vld [vmem:[%s891_s0 + $0x14] sm:$0xf0] }
   0xf   :  { %327 = vmatpush.bf16.msra.mxu1 %v650_v7  ;;  %665 = vmatpush.bf16.msra.mxu3 %v650_v7  ;;  %v533_v27 = vor.u32 %v630_v22, %v530_v23  ;;  %v536_v30 = vld [vmem:[%s891_s0 + $0x50] sm:$0xf]  ;;  %v633_v31 = vld [vmem:[%s891_s0 + $0x54] sm:$0xf0]  ;;  %v624_v32 = vld [vmem:[%s891_s0 + $0x14] sm:$0xf]  ;;  %v505_v36 = vor.u32 %v625_v29, %v504_v28 }
  0x10   :  { %v506_v33 = vld [vmem:[%s891_s0 + $0x18] sm:$0xf0]  ;;  %v632_v34 = vld [vmem:[%s891_s0 + $0x54] sm:$0xf]  ;;  %v537_v37 = vor.u32 %v633_v31, %v536_v30  ;;  %v512_v40 = vld [vmem:[%s891_s0 + $0x20] sm:$0xf] }
  0x11   :  { %v538_v35 = vld [vmem:[%s891_s0 + $0x58] sm:$0xf0]  ;;  %v509_v38 = vor.u32 %v624_v32, %v506_v33  ;;  %v627_v41 = vld [vmem:[%s891_s0 + $0x24] sm:$0xf0]  ;;  %v544_v42 = vld [vmem:[%s891_s0 + $0x60] sm:$0xf] }
  0x12   :  { %279 = vmatpush.bf16.msra.mxu0 %v641_v8  ;;  %658 = vmatpush.bf16.msra.mxu2 %v641_v8  ;;  %v541_v39 = vor.u32 %v632_v34, %v538_v35  ;;  %v635_v43 = vld [vmem:[%s891_s0 + $0x64] sm:$0xf0]  ;;  %v626_v44 = vld [vmem:[%s891_s0 + $0x24] sm:$0xf]  ;;  %v514_v45 = vld [vmem:[%s891_s0 + $0x28] sm:$0xf0]  ;;  %v513_v48 = vor.u32 %v627_v41, %v512_v40 }
  0x13   :  { %328 = vmatpush.bf16.msra.mxu1 %v649_v9  ;;  %666 = vmatpush.bf16.msra.mxu3 %v649_v9  ;;  %v634_v46 = vld [vmem:[%s891_s0 + $0x64] sm:$0xf]  ;;  %v546_v47 = vld [vmem:[%s891_s0 + $0x68] sm:$0xf0]  ;;  %v545_v49 = vor.u32 %v635_v43, %v544_v42  ;;  %v517_v50 = vor.u32 %v626_v44, %v514_v45  ;;  %v520_v52 = vld [vmem:[%s891_s0 + $0x30] sm:$0xf] }
  0x14   :  { %v549_v51 = vor.u32 %v634_v46, %v546_v47  ;;  %v629_v53 = vld [vmem:[%s891_s0 + $0x34] sm:$0xf0]  ;;  %v552_v54 = vld [vmem:[%s891_s0 + $0x70] sm:$0xf]  ;;  %v628_v56 = vld [vmem:[%s891_s0 + $0x34] sm:$0xf] }
  0x15   :  { %v637_v55 = vld [vmem:[%s891_s0 + $0x74] sm:$0xf0]  ;;  %v522_v57 = vld [vmem:[%s891_s0 + $0x38] sm:$0xf0]  ;;  %v636_v58 = vld [vmem:[%s891_s0 + $0x74] sm:$0xf]  ;;  %v521_v60 = vor.u32 %v629_v53, %v520_v52 }
  0x16   :  { %280 = vmatpush.bf16.msra.mxu0 %v640_v10  ;;  %659 = vmatpush.bf16.msra.mxu2 %v640_v10  ;;  %v554_v59 = vld [vmem:[%s891_s0 + $0x78] sm:$0xf0]  ;;  %v553_v61 = vor.u32 %v637_v55, %v552_v54  ;;  %v525_v62 = vor.u32 %v628_v56, %v522_v57  ;;  %v870_v1 = vld [vmem:[%s893_s2] ss:$0 sm:$0xff]  ;;  %s700_s0 = smov [#allocation3]  }
  0x17   :  { %329 = vmatpush.bf16.msra.mxu1 %v648_v11  ;;  %667 = vmatpush.bf16.msra.mxu3 %v648_v11  ;;  %v557_v63 = vor.u32 %v636_v58, %v554_v59  ;;  %s480_s2 = sshll.u32 %s700_s0, 4  ;;  %s481_s2 = int_to_ptr.vmem [resolvable:$true] %s480_s2 }
  0x1a   :  { %281 = vmatpush.bf16.msra.mxu0 %v639_v12  ;;  %660 = vmatpush.bf16.msra.mxu2 %v639_v12 }
  0x1b   :  { %330 = vmatpush.bf16.msra.mxu1 %v647_v13  ;;  %668 = vmatpush.bf16.msra.mxu3 %v647_v13 }
  0x1e   :  { %282 = vmatpush.bf16.msra.mxu0 %v638_v14  ;;  %661 = vmatpush.bf16.msra.mxu2 %v638_v14 }
  0x1f   :  { %331 = vmatpush.bf16.msra.mxu1 %v646_v15  ;;  %669 = vmatpush.bf16.msra.mxu3 %v646_v15 }
  0x21   :  { %283 = vmatmul.bf16.vlgmr.msra.gmra.mxu0 %v497_v24  ;;  %303 = vmatmul.bf16.vlgmr.msra.gmra.mxu2 %v529_v25 }
  0x22   :  { %332 = vmatmul.bf16.vlgmr.msra.gmra.mxu1 %v501_v26  ;;  %352 = vmatmul.bf16.vlgmr.msra.gmra.mxu3 %v533_v27 }
  0x31   :  { %288 = vmatmul.bf16.gmra.mxu0 %v505_v36  ;;  %308 = vmatmul.bf16.gmra.mxu2 %v537_v37 }
  0x32   :  { %337 = vmatmul.bf16.gmra.mxu1 %v509_v38  ;;  %357 = vmatmul.bf16.gmra.mxu3 %v541_v39 }
  0x41   :  { %293 = vmatmul.bf16.gmra.mxu0 %v513_v48  ;;  %313 = vmatmul.bf16.gmra.mxu2 %v545_v49 }
  0x42   :  { %342 = vmatmul.bf16.gmra.mxu1 %v517_v50  ;;  %362 = vmatmul.bf16.gmra.mxu3 %v549_v51 }
  0x51   :  { %298 = vmatmul.bf16.gmra.mxu0 %v521_v60  ;;  %318 = vmatmul.bf16.gmra.mxu2 %v553_v61 }
  0x52   :  { %347 = vmatmul.bf16.gmra.mxu1 %v525_v62  ;;  %367 = vmatmul.bf16.gmra.mxu3 %v557_v63 }
  0x9e   :  { %v284_v0 = vpop.f32.mrf.mxu0 }
  0x9f   :  { %v333_v2 = vpop.f32.mrf.mxu1 }
  0xa0   :  { %v334_v3 = vadd.f32 %v333_v2, %v284_v0 }
  0xa2   :  { %v428_v4 = vadd.f32 %v870_v1, %v334_v3 }
  0xa4   :  { %v444_v5 = vmax.f32 %v428_v4, 0.0  ;;  %v304_v6 = vpop.f32.mrf.mxu2 }
  0xa5   :  { %v353_v7 = vpop.f32.mrf.mxu3 }
  0xa6   :  { %460 = vst [vmem:[#allocation3] sm:$0xff] %v444_v5  ;;  %v354_v8 = vadd.f32 %v353_v7, %v304_v6  ;;  %v286_v9 = vpop.f32.mrf.mxu0 }
  0xa7   :  { %v335_v10 = vpop.f32.mrf.mxu1 }
  0xa8   :  { %v436_v11 = vadd.f32 %v870_v1, %v354_v8  ;;  %v336_v12 = vadd.f32 %v335_v10, %v286_v9 }
  0xaa   :  { %v452_v13 = vmax.f32 %v436_v11, 0.0  ;;  %v429_v14 = vadd.f32 %v870_v1, %v336_v12 }
  0xac   :  { %468 = vst [vmem:[#allocation3 + $0x40] sm:$0xff] %v452_v13  ;;  %v445_v15 = vmax.f32 %v429_v14, 0.0  ;;  %v306_v16 = vpop.f32.mrf.mxu2 }
  0xad   :  { %v355_v17 = vpop.f32.mrf.mxu3 }
  0xae   :  { %461 = vst [vmem:[#allocation3 + $0x8] sm:$0xff] %v445_v15  ;;  %v356_v18 = vadd.f32 %v355_v17, %v306_v16  ;;  %v289_v19 = vpop.f32.mrf.mxu0 }
  0xaf   :  { %v338_v20 = vpop.f32.mrf.mxu1 }
  0xb0   :  { %v437_v21 = vadd.f32 %v870_v1, %v356_v18  ;;  %v339_v22 = vadd.f32 %v338_v20, %v289_v19 }
  0xb2   :  { %v453_v23 = vmax.f32 %v437_v21, 0.0  ;;  %v430_v24 = vadd.f32 %v870_v1, %v339_v22 }
  0xb4   :  { %469 = vst [vmem:[#allocation3 + $0x48] sm:$0xff] %v453_v23  ;;  %v446_v25 = vmax.f32 %v430_v24, 0.0  ;;  %v309_v26 = vpop.f32.mrf.mxu2 }
  0xb5   :  { %v358_v27 = vpop.f32.mrf.mxu3 }
  0xb6   :  { %462 = vst [vmem:[#allocation3 + $0x10] sm:$0xff] %v446_v25  ;;  %v359_v28 = vadd.f32 %v358_v27, %v309_v26  ;;  %v291_v29 = vpop.f32.mrf.mxu0 }
  0xb7   :  { %v340_v30 = vpop.f32.mrf.mxu1 }
  0xb8   :  { %v438_v31 = vadd.f32 %v870_v1, %v359_v28  ;;  %v341_v32 = vadd.f32 %v340_v30, %v291_v29 }
  0xba   :  { %v454_v33 = vmax.f32 %v438_v31, 0.0  ;;  %v431_v34 = vadd.f32 %v870_v1, %v341_v32 }
  0xbc   :  { %470 = vst [vmem:[#allocation3 + $0x50] sm:$0xff] %v454_v33  ;;  %v447_v35 = vmax.f32 %v431_v34, 0.0  ;;  %v311_v36 = vpop.f32.mrf.mxu2 }
  0xbd   :  { %v360_v37 = vpop.f32.mrf.mxu3 }
  0xbe   :  { %463 = vst [vmem:[#allocation3 + $0x18] sm:$0xff] %v447_v35  ;;  %v361_v38 = vadd.f32 %v360_v37, %v311_v36  ;;  %v294_v39 = vpop.f32.mrf.mxu0 }
  0xbf   :  { %v343_v40 = vpop.f32.mrf.mxu1 }
  0xc0   :  { %v439_v41 = vadd.f32 %v870_v1, %v361_v38  ;;  %v344_v42 = vadd.f32 %v343_v40, %v294_v39 }
  0xc2   :  { %v455_v43 = vmax.f32 %v439_v41, 0.0  ;;  %v432_v44 = vadd.f32 %v870_v1, %v344_v42 }
  0xc4   :  { %471 = vst [vmem:[#allocation3 + $0x58] sm:$0xff] %v455_v43  ;;  %v448_v45 = vmax.f32 %v432_v44, 0.0  ;;  %v314_v46 = vpop.f32.mrf.mxu2 }
  0xc5   :  { %v363_v47 = vpop.f32.mrf.mxu3 }
  0xc6   :  { %464 = vst [vmem:[#allocation3 + $0x20] sm:$0xff] %v448_v45  ;;  %v364_v48 = vadd.f32 %v363_v47, %v314_v46  ;;  %v296_v49 = vpop.f32.mrf.mxu0 }
  0xc7   :  { %v345_v50 = vpop.f32.mrf.mxu1 }
  0xc8   :  { %v440_v51 = vadd.f32 %v870_v1, %v364_v48  ;;  %v346_v52 = vadd.f32 %v345_v50, %v296_v49 }
  0xca   :  { %v456_v53 = vmax.f32 %v440_v51, 0.0  ;;  %v433_v54 = vadd.f32 %v870_v1, %v346_v52 }
  0xcc   :  { %472 = vst [vmem:[#allocation3 + $0x60] sm:$0xff] %v456_v53  ;;  %v449_v55 = vmax.f32 %v433_v54, 0.0  ;;  %v316_v56 = vpop.f32.mrf.mxu2 }
  0xcd   :  { %v365_v57 = vpop.f32.mrf.mxu3 }
  0xce   :  { %465 = vst [vmem:[#allocation3 + $0x28] sm:$0xff] %v449_v55  ;;  %v366_v58 = vadd.f32 %v365_v57, %v316_v56  ;;  %v299_v59 = vpop.f32.mrf.mxu0 }
  0xcf   :  { %v348_v60 = vpop.f32.mrf.mxu1 }
  0xd0   :  { %v441_v61 = vadd.f32 %v870_v1, %v366_v58  ;;  %v349_v62 = vadd.f32 %v348_v60, %v299_v59 }
  0xd2   :  { %v457_v63 = vmax.f32 %v441_v61, 0.0  ;;  %v434_v0 = vadd.f32 %v870_v1, %v349_v62 }
  0xd4   :  { %473 = vst [vmem:[#allocation3 + $0x68] sm:$0xff] %v457_v63  ;;  %v450_v2 = vmax.f32 %v434_v0, 0.0  ;;  %v319_v3 = vpop.f32.mrf.mxu2 }
  0xd5   :  { %v368_v4 = vpop.f32.mrf.mxu3 }
  0xd6   :  { %466 = vst [vmem:[#allocation3 + $0x30] sm:$0xff] %v450_v2  ;;  %v369_v5 = vadd.f32 %v368_v4, %v319_v3  ;;  %v301_v6 = vpop.f32.mrf.mxu0 }
  0xd7   :  { %v350_v7 = vpop.f32.mrf.mxu1 }
  0xd8   :  { %v442_v8 = vadd.f32 %v870_v1, %v369_v5  ;;  %v351_v9 = vadd.f32 %v350_v7, %v301_v6 }
  0xda   :  { %v458_v10 = vmax.f32 %v442_v8, 0.0  ;;  %v435_v11 = vadd.f32 %v870_v1, %v351_v9 }
  0xdc   :  { %474 = vst [vmem:[#allocation3 + $0x70] sm:$0xff] %v458_v10  ;;  %v451_v12 = vmax.f32 %v435_v11, 0.0  ;;  %v321_v13 = vpop.f32.mrf.mxu2 }
  0xdd   :  { %v370_v14 = vpop.f32.mrf.mxu3 }
  0xde   :  { %467 = vst [vmem:[#allocation3 + $0x38] sm:$0xff] %v451_v12  ;;  %v371_v15 = vadd.f32 %v370_v14, %v321_v13 }
  0xe0   :  { %v443_v16 = vadd.f32 %v870_v1, %v371_v15 }
  0xe2   :  { %v459_v17 = vmax.f32 %v443_v16, 0.0 }
  0xe4   :  { %475 = vst [vmem:[#allocation3 + $0x78] sm:$0xff] %v459_v17 }
  0xe5   :  { %488 = dma.vmem_to_hbm [thread:$0]  %s481_s2, 2048, %s483_s28, [#allocation4], %s701_s29, %s701_s29, %s702_s30  }
  0xe6   :  { %698 = dma.done.wait [#allocation4], 2048  }
  0xe7   :  { %699 = vsyncadd [#allocation4], 4294965248 }
  0xe8   :  { %493 = vsyncpa [#allocation4], 1 }

// kernel: btnk1_forward.4
= control target key start
LH: loop header
LB: loop body
LE: loop exit
PB: predicated region body
PF: predicated region fallthrough
CT: control target
= control target key end

     0   :  { %s2766_s12 = smov 0   ;;  %s2768_s13 = smov 0   ;;  %s3397_s0 = inlined_call_operand.vmem [shape: bf16[2,10,10,128], index: 0, kind: input, shape index: {}]   ;;  %s3398_s1 = inlined_call_operand.vmem [shape: bf16[9,128,128], index: 1, kind: input, shape index: {}]   ;;  %s3399_s2 = inlined_call_operand.vmem [shape: f32[1,128], index: 2, kind: input, shape index: {}]   ;;  %s3400_s3 = inlined_call_operand.vmem [shape: bf16[2,8,8,128], index: 3, kind: output, shape index: {}]  }
   0x1   :  { %s2770_s14 = smov 0  }
   0x2 LB: > { %s25_s15 = sadd.s32 1, %s2740_s13  ;;  %p2014_p0 = scmp.ge.s32.totalorder %s2744_s14, 1  ;;  %s2744_s14 = sphi %s2770_s14, %s13_s14   ;;  %s2740_s13 = sphi %s2768_s13, %s3406_s13   ;;  %s2736_s12 = sphi %s2766_s12, %s3405_s12  }
   0x3   : > { %p27_p1 = scmp.ge.s32.totalorder %s25_s15, 2  ;;  %p168_p2 = scmp.lt.s32.totalorder %s2744_s14, 3 }
   0x5   : > { %s3408_s15 = smov (%p27_p1, %s25_s15), 0  ;;  %p169_p3 = pnand %p2014_p0, %p168_p2 }
   0x6   : > { %p202_p4 = scmp.lt.s32.totalorder (!%p169_p3), %s2736_s12, 1 }
   0x7   : > { %172 = sbr.rel (%p169_p3) target bundleno = 337 (0x151), region = 32 }
   0xc   : > { %v2592_v0 = vld [vmem:[%s3398_s1 + $0x78] sm:$0xff]  ;;  %v2591_v2 = vld [vmem:[%s3398_s1 + $0x70] sm:$0xff]  ;;  %s3410_s12 = smov (!%p202_p4, %s2736_s12), 1  ;;  %v2590_v6 = vld [vmem:[%s3398_s1 + $0x68] sm:$0xff]  ;;  %vm254_vm0 = vsmask.f32 3328 }
   0xd   : > { %v2600_v1 = vld [vmem:[%s3398_s1 + $0xb8] sm:$0xff]  ;;  %2680 = vmatpush.bf16.msra.mxu1 %v2592_v0  ;;  %450 = vmatpush.bf16.msra.mxu0 %v2592_v0  ;;  %v2599_v3 = vld [vmem:[%s3398_s1 + $0xb0] sm:$0xff]  ;;  %s2696_s26 = smul.u32 80, %s3410_s12  ;;  %v2598_v7 = vld [vmem:[%s3398_s1 + $0xa8] sm:$0xff]  ;;  %vm255_vm1 = vsmask.f32 7440 }
   0xe   : > { %720 = vmatpush.bf16.msra.mxu2 %v2600_v1  ;;  %v2612_v4 = vld [vmem:[%s3398_s1 + $0xf8] sm:$0xff]  ;;  %v2611_v5 = vld [vmem:[%s3398_s1 + $0xf0] sm:$0xff]  ;;  %v2589_v11 = vld [vmem:[%s3398_s1 + $0x60] sm:$0xff]  ;;  %vm604_vm2 = vcmask 1042432   ;;  %vm605_vm3 = vcmask 1046532   ;;  %s2572_s5 = sshll.u32 %s3410_s12, 5 }
   0xf   : > { %855 = vmatpush.bf16.msra.mxu3 %v2612_v4  ;;  %s2814_s8 = scalar_lea.vmem %s3397_s0, %s2696_s26  ;;  %v2597_v16 = vld [vmem:[%s3398_s1 + $0xa0] sm:$0xff]  ;;  %v2610_v17 = vld [vmem:[%s3398_s1 + $0xe8] sm:$0xff]  ;;  %v2588_v29 = vld [vmem:[%s3398_s1 + $0x58] sm:$0xff]  ;;  %s3367_s9 = scalar_lea.vmem %s3400_s3, %s2572_s5 }
  0x10   : > { %v226_v8 = vld [vmem:[%s2814_s8 + $0x20] sm:$0xf]  ;;  %v227_v9 = vld [vmem:[%s2814_s8 + $0x28] sm:$0xf]  ;;  %v2819_v10 = vld [vmem:[%s2814_s8 + $0x24] sm:$0x1] }
  0x11   : > { %2681 = vmatpush.bf16.msra.mxu1 %v2591_v2  ;;  %451 = vmatpush.bf16.msra.mxu0 %v2591_v2  ;;  %v2825_v12 = vld [vmem:[%s2814_s8 + $0x2c] sm:$0x1]  ;;  %v314_v13 = vshrl.u32 %v226_v8, 16  ;;  %v317_v14 = vshll.u32 %v226_v8, 16  ;;  %v328_v15 = vshrl.u32 %v227_v9, 16  ;;  %v331_v18 = vshll.u32 %v227_v9, 16  ;;  %vm2852_vm4 = vmor %vm254_vm0, %vm255_vm1 }
  0x12   : > { %721 = vmatpush.bf16.msra.mxu2 %v2599_v3  ;;  %v222_v19 = vld [vmem:[%s2814_s8] sm:$0xf]  ;;  %v323_v22 = vshll.u32 %v2819_v10, 16  ;;  %v223_v24 = vld [vmem:[%s2814_s8 + $0x8] sm:$0xf]  ;;  %v337_v26 = vshll.u32 %v2825_v12, 16  ;;  %vm2861_vm5 = vmor %vm604_vm2, %vm605_vm3 }
  0x13   : > { %856 = vmatpush.bf16.msra.mxu3 %v2611_v5  ;;  %v316_v20 = vrot.slane %v314_v13, 4  ;;  %v319_v21 = vrot.slane %v317_v14, 5  ;;  %v330_v23 = vrot.slane %v328_v15, 4  ;;  %v333_v25 = vrot.slane %v331_v18, 5  ;;  %v246_v27 = vld [vmem:[%s2814_s8 + $0x4] sm:$0x1] }
  0x14   : > { %v247_v28 = vld [vmem:[%s2814_s8 + $0xc] sm:$0x1]  ;;  %v258_v31 = vshrl.u32 %v222_v19, 16  ;;  %v261_v32 = vshll.u32 %v222_v19, 16  ;;  %v2609_v34 = vld [vmem:[%s3398_s1 + $0xe0] sm:$0xff]  ;;  %v267_v35 = vshll.u32 %v246_v27, 16 }
  0x15   : > { %2682 = vmatpush.bf16.msra.mxu1 %v2590_v6  ;;  %452 = vmatpush.bf16.msra.mxu0 %v2590_v6  ;;  %v320_v30 = vor.u32 %v319_v21, %v316_v20  ;;  %v334_v33 = vor.u32 %v333_v25, %v330_v23  ;;  %v272_v36 = vshrl.u32 %v223_v24, 16  ;;  %v275_v37 = vshll.u32 %v223_v24, 16  ;;  %v580_v38 = vld [vmem:[%s2814_s8] sm:$0xe]  ;;  %v581_v43 = vld [vmem:[%s2814_s8 + $0x8] sm:$0xe] }
  0x16   : > { %722 = vmatpush.bf16.msra.mxu2 %v2598_v7  ;;  %v325_v39 = vrot.slane %v323_v22, 5  ;;  %v260_v40 = vrot.slane %v258_v31, 4  ;;  %v263_v41 = vrot.slane %v261_v32, 5  ;;  %v281_v42 = vshll.u32 %v247_v28, 16  ;;  %v2596_v44 = vld [vmem:[%s3398_s1 + $0x98] sm:$0xff]  ;;  %v2587_v60 = vld [vmem:[%s3398_s1 + $0x50] sm:$0xff] }
  0x17   : > { %857 = vmatpush.bf16.msra.mxu3 %v2610_v17  ;;  %v321_v45 = vrot.slane %v320_v30, 4  ;;  %v339_v46 = vrot.slane %v337_v26, 5  ;;  %v274_v47 = vrot.slane %v272_v36, 4  ;;  %v277_v48 = vrot.slane %v275_v37, 5  ;;  %v2608_v56 = vld [vmem:[%s3398_s1 + $0xd8] sm:$0xff]  ;;  %v2595_v0 = vld [vmem:[%s3398_s1 + $0x90] sm:$0xff] }
  0x18   : > { %v335_v50 = vrot.slane %v334_v33, 4  ;;  %v264_v51 = vor.u32 %v263_v41, %v260_v40  ;;  %v2114_v52 = vrot.slane %v580_v38, 9  ;;  %v609_v53 = vrot.slane %v246_v27, 5  ;;  %v228_v59 = vld [vmem:[%s2814_s8 + $0x30] sm:$0xf]  ;;  %v2586_v14 = vld [vmem:[%s3398_s1 + $0x48] sm:$0xff] }
  0x19   : > { %2683 = vmatpush.bf16.msra.mxu1 %v2589_v11  ;;  %453 = vmatpush.bf16.msra.mxu0 %v2589_v11  ;;  %v269_v54 = vrot.slane %v267_v35, 5  ;;  %v278_v55 = vor.u32 %v277_v48, %v274_v47  ;;  %v2115_v58 = vrot.slane %v581_v43, 9  ;;  %v283_v62 = vrot.slane %v281_v42, 5  ;;  %v229_v3 = vld [vmem:[%s2814_s8 + $0x38] sm:$0xf]  ;;  %v2607_v11 = vld [vmem:[%s3398_s1 + $0xd0] sm:$0xff] }
  0x1a   : > { %723 = vmatpush.bf16.msra.mxu2 %v2597_v16  ;;  %v265_v61 = vrot.slane %v264_v51, 4  ;;  %v613_v63 = vrot.slane %v247_v28, 5  ;;  %v326_v1 = vsel %vm2852_vm4, %v321_v45, %v325_v39  ;;  %v340_v4 = vsel %vm2852_vm4, %v335_v50, %v339_v46  ;;  %v224_v7 = vld [vmem:[%s2814_s8 + $0x10] sm:$0xf]  ;;  %v2594_v19 = vld [vmem:[%s3398_s1 + $0x88] sm:$0xff]  ;;  %v2585_v24 = vld [vmem:[%s3398_s1 + $0x40] sm:$0xff] }
  0x1b   : > { %858 = vmatpush.bf16.msra.mxu3 %v2609_v34  ;;  %v279_v2 = vrot.slane %v278_v55, 4  ;;  %v610_v5 = vsel %vm2861_vm5, %v2114_v52, %v609_v53  ;;  %v342_v6 = vshrl.u32 %v228_v59, 16  ;;  %v345_v13 = vshll.u32 %v228_v59, 16  ;;  %v225_v22 = vld [vmem:[%s2814_s8 + $0x18] sm:$0xf]  ;;  %v2606_v31 = vld [vmem:[%s3398_s1 + $0xc8] sm:$0xff] }
  0x1c   : > { %v270_v8 = vsel %vm2852_vm4, %v265_v61, %v269_v54  ;;  %v614_v9 = vsel %vm2861_vm5, %v2115_v58, %v613_v63  ;;  %v2890_v15 = vunpack.c.l.b16 %v326_v1  ;;  %v356_v17 = vshrl.u32 %v229_v3, 16  ;;  %v2908_v32 = vld [vmem:[%s2814_s8 + $0x34] sm:$0x1]  ;;  %v2911_v36 = vld [vmem:[%s2814_s8 + $0x3c] sm:$0x1]  ;;  %v2593_v42 = vld [vmem:[%s3398_s1 + $0x80] sm:$0xff] }
  0x1d   : > { %2684 = vmatpush.bf16.msra.mxu1 %v2588_v29  ;;  %454 = vmatpush.bf16.msra.mxu0 %v2588_v29  ;;  %v284_v16 = vsel %vm2852_vm4, %v279_v2, %v283_v62  ;;  %v391_v18 = vunpack.c.l.b16 %v340_v4  ;;  %v656_v20 = vunpack.c.l.b16 %v610_v5  ;;  %v359_v21 = vshll.u32 %v229_v3, 16  ;;  %v2584_v29 = vld [vmem:[%s3398_s1 + $0x38] sm:$0xff]  ;;  %v2918_v43 = vld [vmem:[%s2814_s8 + $0x14] sm:$0x1]  ;;  %v2605_v58 = vld [vmem:[%s3398_s1 + $0xc0] sm:$0xff] }
  0x1e   : > { %724 = vmatpush.bf16.msra.mxu2 %v2596_v44  ;;  %v286_v23 = vshrl.u32 %v224_v7, 16  ;;  %v386_v25 = vunpack.c.l.b16 %v270_v8  ;;  %v657_v26 = vunpack.c.l.b16 %v614_v9  ;;  %v344_v27 = vrot.slane %v342_v6, 4  ;;  %v2921_v44 = vld [vmem:[%s2814_s8 + $0x1c] sm:$0x1]  ;;  %v2583_v52 = vld [vmem:[%s3398_s1 + $0x30] sm:$0xff] }
  0x1f   : > { %859 = vmatpush.bf16.msra.mxu3 %v2608_v56  ;;  %v289_v28 = vshll.u32 %v224_v7, 16  ;;  %v387_v30 = vunpack.c.l.b16 %v284_v16  ;;  %v347_v33 = vrot.slane %v345_v13, 5  ;;  %v358_v34 = vrot.slane %v356_v17, 4  ;;  %v2620_v45 = vld [vmem:[%s3398_s1 + $0x138] sm:$0xff]  ;;  %v2196_v63 = vld [vmem:[%s2814_s8 + $0x8] sm:$0xf] }
  0x20   : > { %v361_v35 = vrot.slane %v359_v21, 5  ;;  %v288_v37 = vrot.slane %v286_v23, 4  ;;  %v300_v39 = vshrl.u32 %v225_v22, 16  ;;  %v303_v40 = vshll.u32 %v225_v22, 16  ;;  %v2640_v48 = vld [vmem:[%s3398_s1 + $0x1b8] sm:$0xff]  ;;  %v2619_v1 = vld [vmem:[%s3398_s1 + $0x130] sm:$0xff] }
  0x21   : > { %2685 = vmatpush.bf16.msra.mxu1 %v2587_v60  ;;  %455 = vmatpush.bf16.msra.mxu0 %v2587_v60  ;;  %v291_v38 = vrot.slane %v289_v28, 5  ;;  %v396_v41 = vpack.c.b16 %v391_v18, %v2890_v15  ;;  %v664_v46 = vpack.c.b16 %v657_v26, %v656_v20  ;;  %v351_v47 = vshll.u32 %v2908_v32, 16  ;;  %v2648_v2 = vld [vmem:[%s3398_s1 + $0x1f8] sm:$0xff]  ;;  %v582_v4 = vld [vmem:[%s2814_s8 + $0x10] sm:$0xe]  ;;  %v2638_v26 = vld [vmem:[%s3398_s1 + $0x1a8] sm:$0xff] }
  0x22   : > { %725 = vmatpush.bf16.msra.mxu2 %v2595_v0  ;;  %v302_v50 = vrot.slane %v300_v39, 4  ;;  %v305_v51 = vrot.slane %v303_v40, 5  ;;  %v394_v53 = vpack.c.b16 %v387_v30, %v386_v25  ;;  %v348_v54 = vor.u32 %v347_v33, %v344_v27  ;;  %v2601_v0 = vld [vmem:[%s2814_s8 + $0xc] sm:$0xf0]  ;;  %v583_v5 = vld [vmem:[%s2814_s8 + $0x18] sm:$0xe] }
  0x23   : > { %860 = vmatpush.bf16.msra.mxu3 %v2607_v11  ;;  %v362_v55 = vor.u32 %v361_v35, %v358_v34  ;;  %v365_v56 = vshll.u32 %v2911_v36, 16  ;;  %v292_v59 = vor.u32 %v291_v38, %v288_v37  ;;  %v295_v60 = vshll.u32 %v2918_v43, 16  ;;  %v2639_v6 = vld [vmem:[%s3398_s1 + $0x1b0] sm:$0xff]  ;;  %v2242_v13 = vld [vmem:[%s2814_s8 + $0x8] sm:$0xf]  ;;  %v2581_v37 = vld [vmem:[%s3398_s1 + $0x20] sm:$0xff] }
  0x24   : > { %v306_v61 = vor.u32 %v305_v51, %v302_v50  ;;  %v309_v62 = vshll.u32 %v2921_v44, 16  ;;  %v353_v3 = vrot.slane %v351_v47, 5  ;;  %v349_v7 = vrot.slane %v348_v54, 4  ;;  %v2244_v18 = vld [vmem:[%s2814_s8 + $0x10] sm:$0xf]  ;;  %v2618_v25 = vld [vmem:[%s3398_s1 + $0x128] sm:$0xff] }
  0x25   : > { %2686 = vmatpush.bf16.msra.mxu1 %v2586_v14  ;;  %456 = vmatpush.bf16.msra.mxu0 %v2586_v14  ;;  %v363_v8 = vrot.slane %v362_v55, 4  ;;  %v367_v9 = vrot.slane %v365_v56, 5  ;;  %v2197_v11 = vor.u32 %v2601_v0, %v2196_v63  ;;  %v293_v14 = vrot.slane %v292_v59, 4  ;;  %v2646_v40 = vld [vmem:[%s3398_s1 + $0x1e8] sm:$0xff]  ;;  %v2580_v55 = vld [vmem:[%s3398_s1 + $0x18] sm:$0xff] }
  0x26   : > { %726 = vmatpush.bf16.msra.mxu2 %v2594_v19  ;;  %v297_v15 = vrot.slane %v295_v60, 5  ;;  %v307_v16 = vrot.slane %v306_v61, 4  ;;  %v311_v17 = vrot.slane %v309_v62, 5  ;;  %v2582_v19 = vld [vmem:[%s3398_s1 + $0x28] sm:$0xff]  ;;  %v2116_v20 = vrot.slane %v582_v4, 9 }
  0x27   : > { %861 = vmatpush.bf16.msra.mxu3 %v2606_v31  ;;  %v617_v21 = vrot.slane %v2918_v43, 5  ;;  %v2117_v22 = vrot.slane %v583_v5, 9  ;;  %v621_v23 = vrot.slane %v2921_v44, 5  ;;  %v354_v27 = vsel %vm2852_vm4, %v349_v7, %v353_v3  ;;  %v2617_v43 = vld [vmem:[%s3398_s1 + $0x120] sm:$0xff]  ;;  %v2993_v47 = vld [vmem:[%s2814_s8 + $0xc] sm:$0x1] }
  0x28   : > { %v368_v28 = vsel %vm2852_vm4, %v363_v8, %v367_v9  ;;  %v912_v30 = vshll.u32 %v2242_v13, 16  ;;  %v298_v31 = vsel %vm2852_vm4, %v293_v14, %v297_v15  ;;  %v312_v33 = vsel %vm2852_vm4, %v307_v16, %v311_v17  ;;  %v2637_v44 = vld [vmem:[%s3398_s1 + $0x1a0] sm:$0xff]  ;;  %v2999_v56 = vld [vmem:[%s2814_s8 + $0x14] sm:$0x1]  ;;  %v2200_v62 = vld [vmem:[%s2814_s8 + $0x18] sm:$0xf] }
  0x29   : > { %2687 = vmatpush.bf16.msra.mxu1 %v2585_v24  ;;  %457 = vmatpush.bf16.msra.mxu0 %v2585_v24  ;;  %v2647_v24 = vld [vmem:[%s3398_s1 + $0x1f0] sm:$0xff]  ;;  %v923_v34 = vshrl.u32 %v2244_v18, 16  ;;  %v926_v35 = vshll.u32 %v2244_v18, 16  ;;  %v618_v38 = vsel %vm2861_vm5, %v2116_v20, %v617_v21  ;;  %v622_v39 = vsel %vm2861_vm5, %v2117_v22, %v621_v23  ;;  %v2602_v63 = vld [vmem:[%s2814_s8 + $0x1c] sm:$0xf0]  ;;  %v2636_v17 = vld [vmem:[%s3398_s1 + $0x198] sm:$0xff] }
  0x2a   : > { %727 = vmatpush.bf16.msra.mxu2 %v2593_v42  ;;  %v393_v42 = vunpack.c.l.b16 %v368_v28  ;;  %v914_v50 = vrot.slane %v912_v30, 5  ;;  %v658_v51 = vunpack.c.l.b16 %v618_v38  ;;  %v918_v59 = vshll.u32 %v2993_v47, 16  ;;  %v585_v5 = vld [vmem:[%s2814_s8 + $0x28] sm:$0xe]  ;;  %v2615_v7 = vld [vmem:[%s3398_s1 + $0x110] sm:$0xff]  ;;  %v2645_v21 = vld [vmem:[%s3398_s1 + $0x1e0] sm:$0xff] }
  0x2b   : > { %862 = vmatpush.bf16.msra.mxu3 %v2605_v58  ;;  %v928_v54 = vrot.slane %v926_v35, 5  ;;  %v2616_v58 = vld [vmem:[%s3398_s1 + $0x118] sm:$0xff]  ;;  %v932_v4 = vshll.u32 %v2999_v56, 16  ;;  %v2201_v8 = vor.u32 %v2602_v63, %v2200_v62  ;;  %v625_v14 = vrot.slane %v2819_v10, 5  ;;  %v2578_v10 = vld [vmem:[%s3398_s1 + $0x8] sm:$0xff]  ;;  %v2635_v23 = vld [vmem:[%s3398_s1 + $0x190] sm:$0xff] }
  0x2c   : > { %468 = vmatmul.bf16.vlgmr.msra.gmra.mxu1 %v396_v41  ;;  %458 = vmatmul.bf16.vlgmr.msra.gmra.mxu0 %v394_v53  ;;  %v392_v41 = vunpack.c.l.b16 %v354_v27  ;;  %v925_v53 = vrot.slane %v923_v34, 4  ;;  %v920_v9 = vrot.slane %v918_v59, 5  ;;  %v2119_v15 = vrot.slane %v585_v5, 9  ;;  %v2246_v20 = vld [vmem:[%s2814_s8 + $0x18] sm:$0xf]  ;;  %v2577_v34 = vld [vmem:[%s3398_s1] sm:$0xff] }
  0x2d   : > { %551 = vmatpush.bf16.msrb.mxu1 %v2584_v29  ;;  %1101 = vmatpush.bf16.msrb.mxu0 %v2620_v45  ;;  %v909_v29 = vshrl.u32 %v2242_v13, 16  ;;  %v388_v45 = vunpack.c.l.b16 %v298_v31  ;;  %v629_v16 = vrot.slane %v2825_v12, 5  ;;  %v2248_v22 = vld [vmem:[%s2814_s8 + $0x20] sm:$0xf]  ;;  %v2614_v12 = vld [vmem:[%s3398_s1 + $0x108] sm:$0xff]  ;;  %v937_v28 = vshrl.u32 %v2246_v20, 16 }
  0x2e   : > { %1410 = vmatpush.bf16.msrb.mxu2 %v2640_v48  ;;  %863 = vmatmul.bf16.vlgmr.msra.gmra.mxu3 %v2197_v11  ;;  %v397_v60 = vpack.c.b16 %v393_v42, %v392_v41  ;;  %v929_v3 = vor.u32 %v928_v54, %v925_v53  ;;  %v940_v30 = vshll.u32 %v2246_v20, 16  ;;  %v951_v31 = vshrl.u32 %v2248_v22, 16  ;;  %v2068_v35 = vld [vmem:[%s2814_s8] sm:$0xf]  ;;  %v2627_v53 = vld [vmem:[%s3398_s1 + $0x170] sm:$0xff] }
  0x2f   : > { %728 = vmatmul.bf16.vlgmr.msra.gmra.mxu2 %v664_v46  ;;  %1656 = vmatpush.bf16.msrb.mxu3 %v2648_v2  ;;  %v389_v46 = vunpack.c.l.b16 %v312_v33  ;;  %v911_v48 = vrot.slane %v909_v29, 4  ;;  %v630_v27 = vsel %vm2861_vm5, %v2119_v15, %v629_v16  ;;  %v954_v33 = vshll.u32 %v2248_v22, 16  ;;  %v2613_v38 = vld [vmem:[%s3398_s1 + $0x100] sm:$0xff]  ;;  %v2603_v62 = vld [vmem:[%s2814_s8 + $0x2c] sm:$0xf0] }
  0x30   : > { %v930_v18 = vrot.slane %v929_v3, 4  ;;  %v2250_v3 = vld [vmem:[%s2814_s8 + $0x28] sm:$0xf]  ;;  %v587_v5 = vld [vmem:[%s2814_s8 + $0x38] sm:$0xe]  ;;  %v633_v20 = vrot.slane %v2908_v32, 5 }
  0x31   : > { %552 = vmatpush.bf16.msrb.mxu1 %v2583_v52  ;;  %1102 = vmatpush.bf16.msrb.mxu0 %v2619_v1  ;;  %v659_v52 = vunpack.c.l.b16 %v622_v39  ;;  %v395_v61 = vpack.c.b16 %v389_v46, %v388_v45  ;;  %v915_v0 = vor.u32 %v914_v50, %v911_v48  ;;  %v584_v1 = vld [vmem:[%s2814_s8 + $0x20] sm:$0xe]  ;;  %v2573_v39 = vld [vmem:[%s2814_s8 + $0x4] sm:$0xf0]  ;;  %v3063_v45 = vld [vmem:[%s3398_s1 + $0x238] sm:$0xff]  ;;  %v939_v48 = vrot.slane %v937_v28, 4 }
  0x32   : > { %1411 = vmatpush.bf16.msrb.mxu2 %v2639_v6  ;;  %v2579_v6 = vld [vmem:[%s3398_s1 + $0x10] sm:$0xff]  ;;  %v2118_v11 = vrot.slane %v584_v1, 9  ;;  %v3066_v46 = vld [vmem:[%s2814_s8 + $0x24] sm:$0x1]  ;;  %v942_v50 = vrot.slane %v940_v30, 5  ;;  %v2069_v54 = vor.u32 %v2573_v39, %v2068_v35  ;;  %v965_v15 = vshrl.u32 %v2250_v3, 16 }
  0x33   : > { %1657 = vmatpush.bf16.msrb.mxu3 %v2647_v24  ;;  %v665_v2 = vpack.c.b16 %v659_v52, %v658_v51  ;;  %v916_v13 = vrot.slane %v915_v0, 4  ;;  %v2644_v24 = vld [vmem:[%s3398_s1 + $0x1d8] sm:$0xff]  ;;  %v953_v51 = vrot.slane %v951_v31, 4  ;;  %v956_v52 = vrot.slane %v954_v33, 5  ;;  %v3079_v1 = vld [vmem:[%s3398_s1 + $0x230] sm:$0xff]  ;;  %v2633_v22 = vld [vmem:[%s3398_s1 + $0x180] sm:$0xff] }
  0x34   : > { %v960_v59 = vshll.u32 %v3066_v46, 16  ;;  %v943_v63 = vor.u32 %v942_v50, %v939_v48  ;;  %v968_v16 = vshll.u32 %v2250_v3, 16  ;;  %v2642_v32 = vld [vmem:[%s3398_s1 + $0x1c8] sm:$0xff]  ;;  %v3119_v28 = vld [vmem:[%s3398_s1 + $0x220] sm:$0xff]  ;;  %v2624_v31 = vld [vmem:[%s3398_s1 + $0x158] sm:$0xff] }
  0x35   : > { %553 = vmatpush.bf16.msrb.mxu1 %v2582_v19  ;;  %1103 = vmatpush.bf16.msrb.mxu0 %v2618_v25  ;;  %v934_v19 = vrot.slane %v932_v4, 5  ;;  %v921_v25 = vsel %vm2852_vm4, %v916_v13, %v920_v9  ;;  %v957_v0 = vor.u32 %v956_v52, %v953_v51  ;;  %v586_v4 = vld [vmem:[%s2814_s8 + $0x30] sm:$0xe]  ;;  %v3129_v33 = vld [vmem:[%s2814_s8 + $0x2c] sm:$0x1] }
  0x36   : > { %1412 = vmatpush.bf16.msrb.mxu2 %v2638_v26  ;;  %v626_v26 = vsel %vm2861_vm5, %v2118_v11, %v625_v14  ;;  %v962_v9 = vrot.slane %v960_v59, 5  ;;  %v2252_v11 = vld [vmem:[%s2814_s8 + $0x30] sm:$0xf]  ;;  %v944_v13 = vrot.slane %v943_v63, 4  ;;  %v3132_v39 = vld [vmem:[%s2814_s8 + $0x34] sm:$0x1] }
  0x37   : > { %1658 = vmatpush.bf16.msrb.mxu3 %v2646_v40  ;;  %v935_v29 = vsel %vm2852_vm4, %v930_v18, %v934_v19  ;;  %v1037_v40 = vunpack.c.l.b16 %v921_v25  ;;  %v660_v42 = vunpack.c.l.b16 %v626_v26  ;;  %v958_v14 = vrot.slane %v957_v0, 4  ;;  %v3098_v18 = vld [vmem:[%s3398_s1 + $0x228] sm:$0xff]  ;;  %v2444_v51 = vld [vmem:[%s2814_s8 + $0x18] sm:$0xf]  ;;  %v2604_v63 = vld [vmem:[%s2814_s8 + $0x3c] sm:$0xf0] }
  0x38   : > { %v1038_v41 = vunpack.c.l.b16 %v935_v29  ;;  %v2120_v19 = vrot.slane %v586_v4, 9  ;;  %v967_v26 = vrot.slane %v965_v15, 4  ;;  %v974_v52 = vshll.u32 %v3129_v33, 16  ;;  %v2254_v0 = vld [vmem:[%s2814_s8 + $0x38] sm:$0xf] }
  0x39   : > { %554 = vmatpush.bf16.msrb.mxu1 %v2581_v37  ;;  %1104 = vmatpush.bf16.msrb.mxu0 %v2617_v43  ;;  %v2628_v37 = vld [vmem:[%s3398_s1 + $0x178] sm:$0xff]  ;;  %v661_v43 = vunpack.c.l.b16 %v630_v27  ;;  %v963_v25 = vsel %vm2852_vm4, %v958_v14, %v962_v9  ;;  %v970_v27 = vrot.slane %v968_v16, 5  ;;  %v988_v59 = vshll.u32 %v3132_v39, 16  ;;  %v2256_v16 = vld [vmem:[%s2814_s8 + $0x40] sm:$0xf] }
  0x3a   : > { %1413 = vmatpush.bf16.msrb.mxu2 %v2637_v44  ;;  %v3058_v44 = vld [vmem:[%s2814_s8 + $0x1c] sm:$0x1]  ;;  %v634_v29 = vsel %vm2861_vm5, %v2120_v19, %v633_v20  ;;  %v2641_v19 = vld [vmem:[%s3398_s1 + $0x1c0] sm:$0xff]  ;;  %v996_v20 = vshll.u32 %v2254_v0, 16 }
  0x3b   : > { %1659 = vmatpush.bf16.msrb.mxu3 %v2645_v21  ;;  %v2121_v21 = vrot.slane %v587_v5, 9  ;;  %v971_v50 = vor.u32 %v970_v27, %v967_v26  ;;  %v3150_v5 = vld [vmem:[%s2814_s8 + $0x14] sm:$0x1]  ;;  %v990_v15 = vrot.slane %v988_v59, 5 }
  0x3c   : > { %473 = vmatmul.bf16.gmra.mxu1 %v397_v60  ;;  %463 = vmatmul.bf16.gmra.mxu0 %v395_v61  ;;  %v666_v60 = vpack.c.b16 %v661_v43, %v660_v42  ;;  %v2204_v61 = vld [vmem:[%s2814_s8 + $0x28] sm:$0xf]  ;;  %v2574_v42 = vld [vmem:[%s2814_s8 + $0x14] sm:$0xf0]  ;;  %v662_v43 = vunpack.c.l.b16 %v634_v29  ;;  %v3172_v27 = vld [vmem:[%s3398_s1 + $0x210] sm:$0xff] }
  0x3d   : > { %555 = vmatpush.bf16.msrb.mxu1 %v2580_v55  ;;  %1105 = vmatpush.bf16.msrb.mxu0 %v2616_v58  ;;  %v1045_v55 = vpack.c.b16 %v1038_v41, %v1037_v40  ;;  %v946_v58 = vshll.u32 %v3058_v44, 16  ;;  %v2442_v40 = vld [vmem:[%s2814_s8 + $0x10] sm:$0xf]  ;;  %v972_v4 = vrot.slane %v971_v50, 4  ;;  %v2306_v29 = vld [vmem:[%s2814_s8 + $0x8] sm:$0xe] }
  0x3e   : > { %1414 = vmatpush.bf16.msrb.mxu2 %v2636_v17  ;;  %868 = vmatmul.bf16.gmra.mxu3 %v2201_v8  ;;  %v2643_v17 = vld [vmem:[%s3398_s1 + $0x1d0] sm:$0xff] }
  0x3f   : > { %733 = vmatmul.bf16.gmra.mxu2 %v665_v2  ;;  %1660 = vmatpush.bf16.msrb.mxu3 %v2644_v24  ;;  %v2626_v2 = vld [vmem:[%s3398_s1 + $0x168] sm:$0xff]  ;;  %v948_v8 = vrot.slane %v946_v58, 5  ;;  %v982_v24 = vshll.u32 %v2252_v11, 16  ;;  %v2072_v41 = vld [vmem:[%s2814_s8 + $0x10] sm:$0xf] }
  0x41   : > { %556 = vmatpush.bf16.msrb.mxu1 %v2579_v6  ;;  %1106 = vmatpush.bf16.msrb.mxu0 %v2615_v7  ;;  %v2634_v6 = vld [vmem:[%s3398_s1 + $0x188] sm:$0xff]  ;;  %v2205_v7 = vor.u32 %v2603_v62, %v2204_v61  ;;  %v984_v35 = vrot.slane %v982_v24, 5  ;;  %v2073_v61 = vor.u32 %v2574_v42, %v2072_v41  ;;  %v3185_v42 = vld [vmem:[%s2814_s8 + $0x3c] sm:$0x1] }
  0x42   : > { %1415 = vmatpush.bf16.msrb.mxu2 %v2635_v23  ;;  %v979_v23 = vshrl.u32 %v2252_v11, 16 }
  0x43   : > { %1661 = vmatpush.bf16.msrb.mxu3 %v2643_v17  ;;  %v993_v17 = vshrl.u32 %v2254_v0, 16 }
  0x45   : > { %557 = vmatpush.bf16.msrb.mxu1 %v2578_v10  ;;  %1107 = vmatpush.bf16.msrb.mxu0 %v2614_v12  ;;  %v637_v10 = vrot.slane %v2911_v36, 5  ;;  %v2625_v12 = vld [vmem:[%s3398_s1 + $0x160] sm:$0xff]  ;;  %v949_v36 = vsel %vm2852_vm4, %v944_v13, %v948_v8 }
  0x46   : > { %1416 = vmatpush.bf16.msrb.mxu2 %v2634_v6  ;;  %v976_v6 = vrot.slane %v974_v52, 5 }
  0x47   : > { %v638_v30 = vsel %vm2861_vm5, %v2121_v21, %v637_v10  ;;  %1662 = vmatpush.bf16.msrb.mxu3 %v2642_v32  ;;  %v1473_v10 = vshll.u32 %v3150_v5, 16  ;;  %v1168_v32 = vrot.slane %v2999_v56, 5  ;;  %v995_v56 = vrot.slane %v993_v17, 4 }
  0x48   : > { %v663_v48 = vunpack.c.l.b16 %v638_v30 }
  0x49   : > { %558 = vmatpush.bf16.msrb.mxu1 %v2577_v34  ;;  %1108 = vmatpush.bf16.msrb.mxu0 %v2613_v38  ;;  %v981_v34 = vrot.slane %v979_v23, 4  ;;  %v1040_v38 = vunpack.c.l.b16 %v963_v25  ;;  %v1164_v23 = vrot.slane %v2993_v47, 5  ;;  %v1010_v25 = vshll.u32 %v2256_v16, 16 }
  0x4a   : > { %1417 = vmatpush.bf16.msrb.mxu2 %v2633_v22  ;;  %v667_v3 = vpack.c.b16 %v663_v48, %v662_v43  ;;  %v977_v47 = vsel %vm2852_vm4, %v972_v4, %v976_v6  ;;  %v2396_v4 = vld [vmem:[%s2814_s8 + $0x10] sm:$0xf] }
  0x4b   : > { %v985_v58 = vor.u32 %v984_v35, %v981_v34  ;;  %1663 = vmatpush.bf16.msrb.mxu3 %v2641_v19  ;;  %v2307_v34 = vld [vmem:[%s2814_s8 + $0x10] sm:$0xe]  ;;  %v2314_v35 = vrot.slane %v2306_v29, 9  ;;  %v1012_v52 = vrot.slane %v1010_v25, 5 }
  0x4c   : > { %559 = vmatmul.bf16.vlgmr.msrb.gmra.mxu1 %v2069_v54  ;;  %1109 = vmatmul.bf16.vlgmr.msrb.gmra.mxu0 %v1045_v55  ;;  %v1467_v54 = vshll.u32 %v2442_v40, 16  ;;  %v1478_v55 = vshrl.u32 %v2444_v51, 16  ;;  %v2315_v41 = vrot.slane %v2307_v34, 9  ;;  %v2649_v34 = vld [vmem:[%s3398_s1 + $0x200] sm:$0xff] }
  0x4d   : > { %1275 = vmatpush.bf16.msra.mxu1 %v2628_v37  ;;  %1830 = vmatpush.bf16.msra.mxu0 %v3063_v45  ;;  %v1039_v37 = vunpack.c.l.b16 %v949_v36  ;;  %v986_v14 = vrot.slane %v985_v58, 4  ;;  %v1007_v36 = vshrl.u32 %v2256_v16, 16  ;;  %v1165_v50 = vsel %vm2861_vm5, %v2314_v35, %v1164_v23  ;;  %v3217_v23 = vld [vmem:[%s2814_s8 + $0x2c] sm:$0x1] }
  0x4e   : > { %873 = vmatmul.bf16.gmra.mxu3 %v2205_v7  ;;  %2688 = vmatpush.bf16.msra.mxu2 %v3063_v45  ;;  %v2208_v45 = vld [vmem:[%s2814_s8 + $0x38] sm:$0xf]  ;;  %v3153_v7 = vld [vmem:[%s2814_s8 + $0x1c] sm:$0x1]  ;;  %v1469_v9 = vrot.slane %v1467_v54, 5  ;;  %v1480_v11 = vrot.slane %v1478_v55, 4  ;;  %v1211_v54 = vunpack.c.l.b16 %v1165_v50  ;;  %v1041_v58 = vunpack.c.l.b16 %v977_v47 }
  0x4f   : > { %738 = vmatmul.bf16.gmra.mxu2 %v666_v60  ;;  %v2623_v60 = vld [vmem:[%s3398_s1 + $0x150] sm:$0xff]  ;;  %v1046_v62 = vpack.c.b16 %v1040_v38, %v1039_v37  ;;  %v2209_v13 = vor.u32 %v2604_v63, %v2208_v45  ;;  %v1487_v24 = vshll.u32 %v3153_v7, 16  ;;  %v991_v30 = vsel %vm2852_vm4, %v986_v14, %v990_v15  ;;  %v2076_v55 = vld [vmem:[%s2814_s8 + $0x20] sm:$0xf]  ;;  %v2575_v45 = vld [vmem:[%s2814_s8 + $0x24] sm:$0xf0] }
  0x50   : > { %v998_v37 = vrot.slane %v996_v20, 5  ;;  %v1042_v59 = vunpack.c.l.b16 %v991_v30  ;;  %v1002_v63 = vshll.u32 %v3185_v42, 16  ;;  %v2077_v17 = vor.u32 %v2575_v45, %v2076_v55  ;;  %v2080_v55 = vld [vmem:[%s2814_s8 + $0x30] sm:$0xf] }
  0x51   : > { %1276 = vmatpush.bf16.msra.mxu1 %v2627_v53  ;;  %1831 = vmatpush.bf16.msra.mxu0 %v3079_v1  ;;  %v1464_v53 = vshrl.u32 %v2442_v40, 16  ;;  %v1475_v40 = vrot.slane %v1473_v10, 5  ;;  %v1489_v48 = vrot.slane %v1487_v24, 5 }
  0x52   : > { %2689 = vmatpush.bf16.msra.mxu2 %v3079_v1  ;;  %v2622_v1 = vld [vmem:[%s3398_s1 + $0x148] sm:$0xff] }
  0x53   : > { %v1466_v8 = vrot.slane %v1464_v53, 4  ;;  %v1169_v53 = vsel %vm2861_vm5, %v2315_v41, %v1168_v32 }
  0x55   : > { %1277 = vmatpush.bf16.msra.mxu1 %v2626_v2  ;;  %1832 = vmatpush.bf16.msra.mxu0 %v3098_v18  ;;  %v1481_v2 = vshll.u32 %v2444_v51, 16  ;;  %v1470_v21 = vor.u32 %v1469_v9, %v1466_v8  ;;  %v1009_v51 = vrot.slane %v1007_v36, 4 }
  0x56   : > { %2690 = vmatpush.bf16.msra.mxu2 %v3098_v18  ;;  %v2650_v18 = vld [vmem:[%s3398_s1 + $0x208] sm:$0xff] }
  0x57   : > { %v1483_v22 = vrot.slane %v1481_v2, 5  ;;  %v1471_v38 = vrot.slane %v1470_v21, 4  ;;  %v2446_v2 = vld [vmem:[%s2814_s8 + $0x20] sm:$0xf] }
  0x58   : > { %v1492_v9 = vshrl.u32 %v2446_v2, 16 }
  0x59   : > { %1278 = vmatpush.bf16.msra.mxu1 %v2625_v12  ;;  %1833 = vmatpush.bf16.msra.mxu0 %v3119_v28  ;;  %v2652_v12 = vld [vmem:[%s3398_s1 + $0x218] sm:$0xff]  ;;  %v1484_v26 = vor.u32 %v1483_v22, %v1480_v11  ;;  %v1476_v0 = vsel %vm2852_vm4, %v1471_v38, %v1475_v40  ;;  %v1495_v11 = vshll.u32 %v2446_v2, 16  ;;  %v3214_v22 = vld [vmem:[%s2814_s8 + $0x24] sm:$0x1]  ;;  %v2309_v38 = vld [vmem:[%s2814_s8 + $0x20] sm:$0xe] }
  0x5a   : > { %2691 = vmatpush.bf16.msra.mxu2 %v3119_v28  ;;  %v1013_v28 = vor.u32 %v1012_v52, %v1009_v51  ;;  %v1494_v19 = vrot.slane %v1492_v9, 4  ;;  %v1592_v21 = vunpack.c.l.b16 %v1476_v0  ;;  %v1172_v52 = vrot.slane %v3058_v44, 5 }
  0x5b   : > { %v1485_v43 = vrot.slane %v1484_v26, 4  ;;  %v1497_v20 = vrot.slane %v1495_v11, 5  ;;  %v1004_v26 = vrot.slane %v1002_v63, 5  ;;  %v2506_v63 = vld [vmem:[%s2814_s8 + $0x10] sm:$0xe] }
  0x5c   : > { %564 = vmatmul.bf16.gmra.mxu1 %v2073_v61  ;;  %1114 = vmatmul.bf16.gmra.mxu0 %v1046_v62  ;;  %v1212_v61 = vunpack.c.l.b16 %v1169_v53  ;;  %v999_v62 = vor.u32 %v998_v37, %v995_v56  ;;  %v1014_v29 = vrot.slane %v1013_v28, 4  ;;  %v1501_v56 = vshll.u32 %v3214_v22, 16  ;;  %v2308_v37 = vld [vmem:[%s2814_s8 + $0x18] sm:$0xe] }
  0x5d   : > { %1279 = vmatpush.bf16.msra.mxu1 %v2624_v31  ;;  %1834 = vmatpush.bf16.msra.mxu0 %v2652_v12  ;;  %v2621_v31 = vld [vmem:[%s3398_s1 + $0x140] sm:$0xff]  ;;  %v1490_v6 = vsel %vm2852_vm4, %v1485_v43, %v1489_v48  ;;  %v1498_v30 = vor.u32 %v1497_v20, %v1494_v19  ;;  %v2316_v50 = vrot.slane %v2308_v37, 9  ;;  %v2317_v53 = vrot.slane %v2309_v38, 9 }
  0x5e   : > { %878 = vmatmul.bf16.gmra.mxu3 %v2209_v13  ;;  %v3209_v8 = vpack.c.b16 %v1212_v61, %v1211_v54  ;;  %v2629_v13 = vld [vmem:[%s2814_s8 + $0x14] sm:$0xf0]  ;;  %2692 = vmatpush.bf16.msra.mxu2 %v2652_v12  ;;  %v1593_v10 = vunpack.c.l.b16 %v1490_v6  ;;  %v1000_v25 = vrot.slane %v999_v62, 4  ;;  %v1515_v12 = vshll.u32 %v3217_v23, 16 }
  0x5f   : > { %743 = vmatmul.bf16.gmra.mxu2 %v667_v3  ;;  %v2448_v3 = vld [vmem:[%s2814_s8 + $0x28] sm:$0xf]  ;;  %v2397_v36 = vor.u32 %v2629_v13, %v2396_v4  ;;  %v1503_v43 = vrot.slane %v1501_v56, 5  ;;  %v1176_v54 = vrot.slane %v3066_v46, 5  ;;  %v1719_v62 = vrot.slane %v3150_v5, 5 }
  0x60   : > { %v1506_v15 = vshrl.u32 %v2448_v3, 16  ;;  %v1509_v16 = vshll.u32 %v2448_v3, 16  ;;  %v1005_v40 = vsel %vm2852_vm4, %v1000_v25, %v1004_v26  ;;  %v1517_v48 = vrot.slane %v1515_v12, 5  ;;  %v2507_v3 = vld [vmem:[%s2814_s8 + $0x18] sm:$0xe] }
  0x61   : > { %1280 = vmatpush.bf16.msra.mxu1 %v2623_v60  ;;  %1835 = vmatpush.bf16.msra.mxu0 %v3172_v27  ;;  %v3198_v60 = vld [vmem:[%s2814_s8 + $0x44] sm:$0x1]  ;;  %v1043_v45 = vunpack.c.l.b16 %v1005_v40  ;;  %v1177_v61 = vsel %vm2861_vm5, %v2317_v53, %v1176_v54  ;;  %v2450_v4 = vld [vmem:[%s2814_s8 + $0x30] sm:$0xf]  ;;  %v2452_v6 = vld [vmem:[%s2814_s8 + $0x38] sm:$0xf] }
  0x62   : > { %v1016_v14 = vshll.u32 %v3198_v60, 16  ;;  %v1508_v24 = vrot.slane %v1506_v15, 4  ;;  %v1511_v32 = vrot.slane %v1509_v16, 5  ;;  %2693 = vmatpush.bf16.msra.mxu2 %v3172_v27  ;;  %v1499_v27 = vrot.slane %v1498_v30, 4  ;;  %v2400_v16 = vld [vmem:[%s2814_s8 + $0x20] sm:$0xf] }
  0x63   : > { %v1214_v0 = vunpack.c.l.b16 %v1177_v61  ;;  %v1520_v11 = vshrl.u32 %v2450_v4, 16  ;;  %v1523_v13 = vshll.u32 %v2450_v4, 16  ;;  %v1534_v5 = vshrl.u32 %v2452_v6, 16  ;;  %v2310_v53 = vld [vmem:[%s2814_s8 + $0x28] sm:$0xe] }
  0x64   : > { %v1018_v47 = vrot.slane %v1016_v14, 5  ;;  %v1512_v35 = vor.u32 %v1511_v32, %v1508_v24  ;;  %v1504_v46 = vsel %vm2852_vm4, %v1499_v27, %v1503_v43  ;;  %v1723_v15 = vrot.slane %v3153_v7, 5  ;;  %v2311_v54 = vld [vmem:[%s2814_s8 + $0x30] sm:$0xe]  ;;  %v2508_v4 = vld [vmem:[%s2814_s8 + $0x20] sm:$0xe] }
  0x65   : > { %1281 = vmatpush.bf16.msra.mxu1 %v2622_v1  ;;  %1836 = vmatpush.bf16.msra.mxu0 %v2650_v18  ;;  %v1047_v1 = vpack.c.b16 %v1042_v59, %v1041_v58  ;;  %v1173_v59 = vsel %vm2861_vm5, %v2316_v50, %v1172_v52  ;;  %v1594_v19 = vunpack.c.l.b16 %v1504_v46  ;;  %v1522_v24 = vrot.slane %v1520_v11, 4  ;;  %v2404_v50 = vld [vmem:[%s2814_s8 + $0x30] sm:$0xf]  ;;  %v2509_v11 = vld [vmem:[%s2814_s8 + $0x28] sm:$0xe] }
  0x66   : > { %v1019_v41 = vsel %vm2852_vm4, %v1014_v29, %v1018_v47  ;;  %2694 = vmatpush.bf16.msra.mxu2 %v2650_v18  ;;  %v1513_v51 = vrot.slane %v1512_v35, 4  ;;  %v2576_v18 = vld [vmem:[%s2814_s8 + $0x34] sm:$0xf0]  ;;  %v1213_v44 = vunpack.c.l.b16 %v1173_v59  ;;  %v1525_v32 = vrot.slane %v1523_v13, 5  ;;  %v3254_v29 = vld [vmem:[%s2814_s8 + $0x34] sm:$0x1] }
  0x67   : > { %v1044_v58 = vunpack.c.l.b16 %v1019_v41  ;;  %v2081_v28 = vor.u32 %v2576_v18, %v2080_v55  ;;  %v3257_v47 = vld [vmem:[%s2814_s8 + $0x3c] sm:$0x1]  ;;  %v2454_v55 = vld [vmem:[%s2814_s8 + $0x40] sm:$0xf]  ;;  %v2319_v59 = vrot.slane %v2311_v54, 9  ;;  %v1184_v61 = vrot.slane %v3132_v39, 5 }
  0x68   : > { %v1518_v2 = vsel %vm2852_vm4, %v1513_v51, %v1517_v48  ;;  %v3248_v9 = vpack.c.b16 %v1214_v0, %v1213_v44  ;;  %v1526_v12 = vor.u32 %v1525_v32, %v1522_v24  ;;  %v1543_v35 = vshll.u32 %v3257_v47, 16  ;;  %v2456_v18 = vld [vmem:[%s2814_s8 + $0x48] sm:$0xf] }
  0x69   : > { %1282 = vmatpush.bf16.msra.mxu1 %v2621_v31  ;;  %v1600_v31 = vpack.c.b16 %v1593_v10, %v1592_v21  ;;  %1837 = vmatpush.bf16.msra.mxu0 %v2649_v34  ;;  %v1048_v14 = vpack.c.b16 %v1044_v58, %v1043_v45  ;;  %v1595_v20 = vunpack.c.l.b16 %v1518_v2  ;;  %v2514_v21 = vrot.slane %v2506_v63, 9 }
  0x6a   : > { %2695 = vmatpush.bf16.msra.mxu2 %v2649_v34  ;;  %v2515_v10 = vrot.slane %v2507_v3, 9  ;;  %v1527_v40 = vrot.slane %v1526_v12, 4  ;;  %v1545_v43 = vrot.slane %v1543_v35, 5  ;;  %v2318_v45 = vrot.slane %v2310_v53, 9 }
  0x6b   : > { %v1601_v30 = vpack.c.b16 %v1595_v20, %v1594_v19  ;;  %v1720_v7 = vsel %vm2861_vm5, %v2514_v21, %v1719_v62  ;;  %v1180_v58 = vrot.slane %v3129_v33, 5  ;;  %v2631_v62 = vld [vmem:[%s2814_s8 + $0x34] sm:$0xf0]  ;;  %v1548_v63 = vshrl.u32 %v2454_v55, 16 }
  0x6c   : > { %569 = vmatmul.bf16.gmra.mxu1 %v2077_v17  ;;  %1119 = vmatmul.bf16.gmra.mxu0 %v1047_v1  ;;  %v2630_v17 = vld [vmem:[%s2814_s8 + $0x24] sm:$0xf0]  ;;  %v1537_v1 = vshll.u32 %v2452_v6, 16  ;;  %v1724_v56 = vsel %vm2861_vm5, %v2515_v10, %v1723_v15  ;;  %v1766_v37 = vunpack.c.l.b16 %v1720_v7  ;;  %v1551_v44 = vshll.u32 %v2454_v55, 16  ;;  %v3284_v15 = vld [vmem:[%s2814_s8 + $0x44] sm:$0x1] }
  0x6d   : > { %v2401_v26 = vor.u32 %v2630_v17, %v2400_v16  ;;  %v1767_v38 = vunpack.c.l.b16 %v1724_v56  ;;  %v1562_v0 = vshrl.u32 %v2456_v18, 16  ;;  %v1565_v46 = vshll.u32 %v2456_v18, 16  ;;  %v3287_v16 = vld [vmem:[%s2814_s8 + $0x4c] sm:$0x1] }
  0x6e   : > { %1664 = vmatmul.bf16.vlgmr.msrb.gmra.mxu3 %v1600_v31  ;;  %v1539_v25 = vrot.slane %v1537_v1, 5  ;;  %v1529_v31 = vshll.u32 %v3254_v29, 16  ;;  %v1181_v6 = vsel %vm2861_vm5, %v2318_v45, %v1180_v58  ;;  %v1185_v33 = vsel %vm2861_vm5, %v2319_v59, %v1184_v61  ;;  %v2511_v61 = vld [vmem:[%s2814_s8 + $0x38] sm:$0xe] }
  0x6f   : > { %1418 = vmatmul.bf16.vlgmr.msrb.gmra.mxu2 %v2397_v36  ;;  %v1536_v36 = vrot.slane %v1534_v5, 4  ;;  %v1774_v48 = vpack.c.b16 %v1767_v38, %v1766_v37  ;;  %v1215_v13 = vunpack.c.l.b16 %v1181_v6  ;;  %v1216_v39 = vunpack.c.l.b16 %v1185_v33  ;;  %v2312_v38 = vld [vmem:[%s2814_s8 + $0x38] sm:$0xe] }
  0x70   : > { %v1531_v41 = vrot.slane %v1529_v31, 5  ;;  %v1550_v5 = vrot.slane %v1548_v63, 4  ;;  %v1564_v17 = vrot.slane %v1562_v0, 4  ;;  %v1567_v1 = vrot.slane %v1565_v46, 5  ;;  %v2513_v63 = vld [vmem:[%s2814_s8 + $0x48] sm:$0xe] }
  0x71   : > { %v1540_v34 = vor.u32 %v1539_v25, %v1536_v36  ;;  %v2516_v19 = vrot.slane %v2508_v4, 9  ;;  %v3289_v20 = vpack.c.b16 %v1216_v39, %v1215_v13  ;;  %v1727_v10 = vrot.slane %v3214_v22, 5 }
  0x72   : > { %v1532_v51 = vsel %vm2852_vm4, %v1527_v40, %v1531_v41  ;;  %v2517_v24 = vrot.slane %v2509_v11, 9  ;;  %v1731_v32 = vrot.slane %v3217_v23, 5  ;;  %v1557_v25 = vshll.u32 %v3284_v15, 16  ;;  %v2313_v40 = vld [vmem:[%s2814_s8 + $0x40] sm:$0xe] }
  0x73   : > { %v1541_v27 = vrot.slane %v1540_v34, 4  ;;  %v1596_v2 = vunpack.c.l.b16 %v1532_v51  ;;  %v1728_v7 = vsel %vm2861_vm5, %v2516_v19, %v1727_v10  ;;  %v2320_v41 = vrot.slane %v2312_v38, 9  ;;  %v2632_v51 = vld [vmem:[%s2814_s8 + $0x44] sm:$0xf0] }
  0x74   : > { %v1732_v22 = vsel %vm2861_vm5, %v2517_v24, %v1731_v32  ;;  %v1559_v23 = vrot.slane %v1557_v25, 5  ;;  %v1768_v31 = vunpack.c.l.b16 %v1728_v7  ;;  %v1735_v0 = vrot.slane %v3254_v29, 5 }
  0x75   : > { %v1546_v52 = vsel %vm2852_vm4, %v1541_v27, %v1545_v43  ;;  %v1769_v34 = vunpack.c.l.b16 %v1732_v22  ;;  %v1188_v27 = vrot.slane %v3185_v42, 5  ;;  %v2321_v43 = vrot.slane %v2313_v40, 9  ;;  %v2510_v42 = vld [vmem:[%s2814_s8 + $0x30] sm:$0xe] }
  0x76   : > { %v1597_v3 = vunpack.c.l.b16 %v1546_v52  ;;  %v2519_v46 = vrot.slane %v2511_v61, 9  ;;  %v1747_v4 = vrot.slane %v3287_v16, 5  ;;  %v2521_v33 = vrot.slane %v2513_v63, 9 }
  0x77   : > { %v1775_v52 = vpack.c.b16 %v1769_v34, %v1768_v31  ;;  %v1189_v53 = vsel %vm2861_vm5, %v2320_v41, %v1188_v27 }
  0x78   : > { %v1602_v21 = vpack.c.b16 %v1597_v3, %v1596_v2  ;;  %v1217_v45 = vunpack.c.l.b16 %v1189_v53  ;;  %v1739_v2 = vrot.slane %v3257_v47, 5  ;;  %v1743_v3 = vrot.slane %v3284_v15, 5 }
  0x79   : > { %v1748_v29 = vsel %vm2861_vm5, %v2521_v33, %v1747_v4 }
  0x7c   : > { %574 = vmatmul.bf16.gmra.mxu1 %v2081_v28  ;;  %1124 = vmatmul.bf16.gmra.mxu0 %v1048_v14  ;;  %v1553_v28 = vrot.slane %v1551_v44, 5  ;;  %v2405_v14 = vor.u32 %v2631_v62, %v2404_v50  ;;  %v2408_v50 = vld [vmem:[%s2814_s8 + $0x40] sm:$0xf]  ;;  %v2518_v44 = vrot.slane %v2510_v42, 9 }
  0x7d   : > { %v2409_v59 = vor.u32 %v2632_v51, %v2408_v50  ;;  %v2512_v62 = vld [vmem:[%s2814_s8 + $0x40] sm:$0xe] }
  0x7e   : > { %1669 = vmatmul.bf16.gmra.mxu3 %v1601_v30  ;;  %v1554_v36 = vor.u32 %v1553_v28, %v1550_v5  ;;  %v1571_v30 = vshll.u32 %v3287_v16, 16  ;;  %v2520_v6 = vrot.slane %v2512_v62, 9  ;;  %v1736_v11 = vsel %vm2861_vm5, %v2518_v44, %v1735_v0 }
  0x7f   : > { %1423 = vmatmul.bf16.gmra.mxu2 %v2401_v26  ;;  %v1568_v26 = vor.u32 %v1567_v1, %v1564_v17  ;;  %v1770_v47 = vunpack.c.l.b16 %v1736_v11  ;;  %v1773_v28 = vunpack.c.l.b16 %v1748_v29 }
  0x80   : > { %v1573_v12 = vrot.slane %v1571_v30, 5  ;;  %v1744_v13 = vsel %vm2861_vm5, %v2520_v6, %v1743_v3 }
  0x81   : > { %v1569_v56 = vrot.slane %v1568_v26, 4  ;;  %v1772_v5 = vunpack.c.l.b16 %v1744_v13 }
  0x83   : > { %v1574_v37 = vsel %vm2852_vm4, %v1569_v56, %v1573_v12  ;;  %v1777_v17 = vpack.c.b16 %v1773_v28, %v1772_v5 }
  0x84   : > { %v1599_v55 = vunpack.c.l.b16 %v1574_v37 }
  0x8c   : > { %1283 = vmatmul.bf16.vlgmr.msra.gmra.mxu1 %v3209_v8  ;;  %1838 = vmatmul.bf16.vlgmr.msra.gmra.mxu0 %v1774_v48  ;;  %v1555_v8 = vrot.slane %v1554_v36, 4  ;;  %v1192_v48 = vrot.slane %v3198_v60, 5 }
  0x8e   : > { %1674 = vmatmul.bf16.gmra.mxu3 %v1602_v21  ;;  %v1560_v35 = vsel %vm2852_vm4, %v1555_v8, %v1559_v23  ;;  %v1193_v49 = vsel %vm2861_vm5, %v2321_v43, %v1192_v48 }
  0x8f   : > { %1428 = vmatmul.bf16.gmra.mxu2 %v2405_v14  ;;  %v1598_v54 = vunpack.c.l.b16 %v1560_v35  ;;  %v1218_v58 = vunpack.c.l.b16 %v1193_v49 }
  0x91   : > { %v1222_v18 = vpack.c.b16 %v1218_v58, %v1217_v45  ;;  %v1603_v60 = vpack.c.b16 %v1599_v55, %v1598_v54 }
  0x9c   : > { %1288 = vmatmul.bf16.gmra.mxu1 %v3248_v9  ;;  %1843 = vmatmul.bf16.gmra.mxu0 %v1775_v52  ;;  %v1740_v9 = vsel %vm2861_vm5, %v2519_v46, %v1739_v2 }
  0x9d   : > { %v1771_v39 = vunpack.c.l.b16 %v1740_v9 }
  0x9e   : > { %1679 = vmatmul.bf16.gmra.mxu3 %v1603_v60 }
  0x9f   : > { %1433 = vmatmul.bf16.gmra.mxu2 %v2409_v59  ;;  %v1776_v14 = vpack.c.b16 %v1771_v39, %v1770_v47 }
  0xa9   : > { %v469_v15 = vpop.f32.mrf.mxu1  ;;  %v459_v16 = vpop.f32.mrf.mxu0 }
  0xac   : > { %1293 = vmatmul.bf16.gmra.mxu1 %v3289_v20  ;;  %1848 = vmatmul.bf16.gmra.mxu0 %v1776_v14 }
  0xaf   : > { %1853 = vmatmul.bf16.vlgmr.msra.gmra.mxu2 %v1777_v17 }
  0xb1   : > { %v471_v19 = vpop.f32.mrf.mxu1  ;;  %v461_v21 = vpop.f32.mrf.mxu0 }
  0xb2   : > { %v729_v1 = vpop.f32.mrf.mxu2  ;;  %v864_v10 = vpop.f32.mrf.mxu3 }
  0xb9   : > { %v474_v32 = vpop.f32.mrf.mxu1  ;;  %v464_v57 = vpop.f32.mrf.mxu0 }
  0xba   : > { %v731_v24 = vpop.f32.mrf.mxu2  ;;  %v3332_v36 = vpop.f32.mrf.mxu3 }
  0xbc   : > { %1298 = vmatmul.bf16.gmra.mxu1 %v1222_v18 }
  0xc1   : > { %v476_v26 = vpop.f32.mrf.mxu1  ;;  %v466_v30 = vpop.f32.mrf.mxu0 }
  0xc2   : > { %v734_v25 = vpop.f32.mrf.mxu2  ;;  %v869_v7 = vpop.f32.mrf.mxu3 }
  0xc9   : > { %v560_v8 = vpop.f32.mrf.mxu1  ;;  %v1110_v23 = vpop.f32.mrf.mxu0 }
  0xca   : > { %v736_v22 = vpop.f32.mrf.mxu2  ;;  %v561_v20 = vadd.f32 %v560_v8, %v459_v16  ;;  %v3334_v12 = vpop.f32.mrf.mxu3 }
  0xcc   : > { %v749_v56 = vadd.f32 %v729_v1, %v561_v20 }
  0xce   : > { %v884_v31 = vadd.f32 %v864_v10, %v749_v56 }
  0xd0   : > { %v1130_v34 = vadd.f32 %v1110_v23, %v884_v31 }
  0xd1   : > { %v562_v37 = vpop.f32.mrf.mxu1  ;;  %v1112_v38 = vpop.f32.mrf.mxu0 }
  0xd2   : > { %v739_v35 = vpop.f32.mrf.mxu2  ;;  %v563_v40 = vadd.f32 %v562_v37, %v461_v21  ;;  %v874_v27 = vpop.f32.mrf.mxu3 }
  0xd4   : > { %v750_v41 = vadd.f32 %v731_v24, %v563_v40 }
  0xd9   : > { %v565_v48 = vpop.f32.mrf.mxu1  ;;  %v1115_v50 = vpop.f32.mrf.mxu0 }
  0xda   : > { %v741_v43 = vpop.f32.mrf.mxu2  ;;  %v566_v51 = vadd.f32 %v565_v48, %v464_v57  ;;  %v3336_v55 = vpop.f32.mrf.mxu3 }
  0xdc   : > { %v751_v52 = vadd.f32 %v734_v25, %v566_v51 }
  0xde   : > { %v886_v53 = vadd.f32 %v869_v7, %v751_v52 }
  0xe0   : > { %v1132_v49 = vadd.f32 %v1115_v50, %v886_v53 }
  0xe1   : > { %v567_v45 = vpop.f32.mrf.mxu1  ;;  %v3338_v58 = vpop.f32.mrf.mxu0 }
  0xe2   : > { %v744_v54 = vpop.f32.mrf.mxu2  ;;  %v568_v59 = vadd.f32 %v567_v45, %v466_v30  ;;  %v879_v60 = vpop.f32.mrf.mxu3  ;;  %v885_v30 = vadd.f32 %v3332_v36, %v750_v41 }
  0xe4   : > { %v752_v42 = vadd.f32 %v736_v22, %v568_v59  ;;  %v1131_v7 = vadd.f32 %v1112_v38, %v885_v30 }
  0xe6   : > { %v887_v48 = vadd.f32 %v3334_v12, %v752_v42 }
  0xe8   : > { %v1133_v59 = vadd.f32 %v3338_v58, %v887_v48 }
  0xe9   : > { %v570_v18 = vpop.f32.mrf.mxu1  ;;  %v1120_v62 = vpop.f32.mrf.mxu0 }
  0xea   : > { %v746_v61 = vpop.f32.mrf.mxu2  ;;  %v571_v63 = vadd.f32 %v570_v18, %v469_v15  ;;  %v3346_v11 = vpop.f32.mrf.mxu3 }
  0xec   : > { %v753_v44 = vadd.f32 %v739_v35, %v571_v63 }
  0xee   : > { %v888_v0 = vadd.f32 %v874_v27, %v753_v44 }
  0xf0   : > { %v3340_v46 = vadd.f32 %v1120_v62, %v888_v0 }
  0xf1   : > { %v572_v3 = vpop.f32.mrf.mxu1  ;;  %v3342_v4 = vpop.f32.mrf.mxu0 }
  0xf2   : > { %v1419_v2 = vpop.f32.mrf.mxu2  ;;  %v573_v6 = vadd.f32 %v572_v3, %v471_v19  ;;  %v1665_v28 = vpop.f32.mrf.mxu3 }
  0xf4   : > { %v3344_v33 = vadd.f32 %v741_v43, %v573_v6 }
  0xf9   : > { %v575_v13 = vpop.f32.mrf.mxu1  ;;  %v1125_v29 = vpop.f32.mrf.mxu0 }
  0xfa   : > { %v1421_v9 = vpop.f32.mrf.mxu2  ;;  %v576_v47 = vadd.f32 %v575_v13, %v474_v32  ;;  %v1667_v19 = vpop.f32.mrf.mxu3  ;;  %v889_v13 = vadd.f32 %v3336_v55, %v3344_v33 }
  0xfc   : > { %v755_v39 = vadd.f32 %v744_v54, %v576_v47 }
  0xfe   : > { %v890_v5 = vadd.f32 %v879_v60, %v755_v39 }
 0x100   : > { %v3348_v14 = vadd.f32 %v1125_v29, %v890_v5 }
 0x101   : > { %v577_v16 = vpop.f32.mrf.mxu1  ;;  %v3350_v17 = vpop.f32.mrf.mxu0 }
 0x102   : > { %v1424_v15 = vpop.f32.mrf.mxu2  ;;  %v578_v1 = vadd.f32 %v577_v16, %v476_v26  ;;  %v1670_v56 = vpop.f32.mrf.mxu3  ;;  %v3358_v26 = vld [vmem:[%s3399_s2] ss:$0 sm:$0xff] }
 0x104   : > { %v3352_v21 = vadd.f32 %v746_v61, %v578_v1 }
 0x109   : > { %v1284_v10 = vpop.f32.mrf.mxu1  ;;  %v1839_v24 = vpop.f32.mrf.mxu0 }
 0x10a   : > { %v1304_v57 = vadd.f32 %v1284_v10, %v1130_v34  ;;  %v1426_v25 = vpop.f32.mrf.mxu2  ;;  %v1672_v53 = vpop.f32.mrf.mxu3 }
 0x10c   : > { %v1439_v32 = vadd.f32 %v1419_v2, %v1304_v57 }
 0x10e   : > { %v1685_v22 = vadd.f32 %v1665_v28, %v1439_v32  ;;  %v1135_v28 = vadd.f32 %v3342_v4, %v889_v13 }
 0x110   : > { %v1859_v31 = vadd.f32 %v1839_v24, %v1685_v22  ;;  %v891_v22 = vadd.f32 %v3346_v11, %v3352_v21 }
 0x111   : > { %v1286_v8 = vpop.f32.mrf.mxu1  ;;  %v1841_v23 = vpop.f32.mrf.mxu0 }
 0x112   : > { %v1305_v20 = vadd.f32 %v1286_v8, %v1131_v7  ;;  %v1429_v37 = vpop.f32.mrf.mxu2  ;;  %v1871_v40 = vadd.f32 %v3358_v26, %v1859_v31  ;;  %v1675_v60 = vpop.f32.mrf.mxu3 }
 0x114   : > { %v1440_v35 = vadd.f32 %v1421_v9, %v1305_v20  ;;  %v1879_v50 = vmax.f32 %v1871_v40, 0.0 }
 0x116   : > { %v1686_v34 = vadd.f32 %v1667_v19, %v1440_v35  ;;  %v1137_v35 = vadd.f32 %v3350_v17, %v891_v22 }
 0x118   : > { %v1860_v36 = vadd.f32 %v1841_v23, %v1686_v34 }
 0x119   : > { %v1289_v41 = vpop.f32.mrf.mxu1  ;;  %v1844_v27 = vpop.f32.mrf.mxu0 }
 0x11a   : > { %v1872_v38 = vadd.f32 %v3358_v26, %v1860_v36  ;;  %v1306_v43 = vadd.f32 %v1289_v41, %v1132_v49  ;;  %v1431_v45 = vpop.f32.mrf.mxu2  ;;  %v1677_v16 = vpop.f32.mrf.mxu3 }
 0x11c   : > { %v1880_v51 = vmax.f32 %v1872_v38, 0.0  ;;  %v1441_v52 = vadd.f32 %v1424_v15, %v1306_v43 }
 0x11e   : > { %v2660_v54 = vpack.c.bf16 %v1880_v51, %v1879_v50  ;;  %v1687_v61 = vadd.f32 %v1670_v56, %v1441_v52 }
 0x120   : > { %2661 = vst [vmem:[%s3367_s9] sm:$0xff] %v2660_v54   ;;  %v1861_v12 = vadd.f32 %v1844_v27, %v1687_v61 }
 0x121   : > { %v1291_v18 = vpop.f32.mrf.mxu1  ;;  %v1846_v49 = vpop.f32.mrf.mxu0 }
 0x122   : > { %v1307_v62 = vadd.f32 %v1291_v18, %v1133_v59  ;;  %v1873_v44 = vadd.f32 %v3358_v26, %v1861_v12  ;;  %v1434_v2 = vpop.f32.mrf.mxu2  ;;  %v1680_v4 = vpop.f32.mrf.mxu3 }
 0x124   : > { %v1442_v42 = vadd.f32 %v1426_v25, %v1307_v62  ;;  %v1881_v29 = vmax.f32 %v1873_v44, 0.0 }
 0x126   : > { %v1688_v63 = vadd.f32 %v1672_v53, %v1442_v42 }
 0x128   : > { %v1862_v0 = vadd.f32 %v1846_v49, %v1688_v63 }
 0x129   : > { %v1294_v3 = vpop.f32.mrf.mxu1  ;;  %v1849_v58 = vpop.f32.mrf.mxu0 }
 0x12a   : > { %v1874_v6 = vadd.f32 %v3358_v26, %v1862_v0  ;;  %v1308_v9 = vadd.f32 %v1294_v3, %v3340_v46  ;;  %v1436_v10 = vpop.f32.mrf.mxu2  ;;  %v1682_v27 = vpop.f32.mrf.mxu3 }
 0x12c   : > { %v1882_v47 = vmax.f32 %v1874_v6, 0.0  ;;  %v1443_v39 = vadd.f32 %v1429_v37, %v1308_v9 }
 0x12e   : > { %v2665_v5 = vpack.c.bf16 %v1882_v47, %v1881_v29  ;;  %v1689_v15 = vadd.f32 %v1675_v60, %v1443_v39 }
 0x130   : > { %2677 = vst [vmem:[%s3367_s9 + $0x8] sm:$0xff] %v2665_v5   ;;  %v1863_v24 = vadd.f32 %v1849_v58, %v1689_v15 }
 0x131   : > { %v1296_v1 = vpop.f32.mrf.mxu1  ;;  %v1851_v46 = vpop.f32.mrf.mxu0 }
 0x132   : > { %v1309_v19 = vadd.f32 %v1296_v1, %v1135_v28  ;;  %v1875_v30 = vadd.f32 %v3358_v26, %v1863_v24  ;;  %v1854_v56 = vpop.f32.mrf.mxu2 }
 0x134   : > { %v1444_v57 = vadd.f32 %v1431_v45, %v1309_v19  ;;  %v1883_v8 = vmax.f32 %v1875_v30, 0.0 }
 0x136   : > { %v1690_v25 = vadd.f32 %v1677_v16, %v1444_v57 }
 0x138   : > { %v1864_v55 = vadd.f32 %v1851_v46, %v1690_v25 }
 0x139   : > { %v1299_v33 = vpop.f32.mrf.mxu1 }
 0x13a   : > { %v1876_v32 = vadd.f32 %v3358_v26, %v1864_v55  ;;  %v1310_v7 = vadd.f32 %v1299_v33, %v3348_v14  ;;  %v1856_v38 = vpop.f32.mrf.mxu2 }
 0x13c   : > { %v1884_v23 = vmax.f32 %v1876_v32, 0.0  ;;  %v1445_v20 = vadd.f32 %v1434_v2, %v1310_v7 }
 0x13e   : > { %v2670_v31 = vpack.c.bf16 %v1884_v23, %v1883_v8  ;;  %v1691_v37 = vadd.f32 %v1680_v4, %v1445_v20 }
 0x140   : > { %2678 = vst [vmem:[%s3367_s9 + $0x10] sm:$0xff] %v2670_v31   ;;  %v1865_v36 = vadd.f32 %v1854_v56, %v1691_v37 }
 0x141   : > { %v1301_v34 = vpop.f32.mrf.mxu1 }
 0x142   : > { %v1311_v40 = vadd.f32 %v1301_v34, %v1137_v35  ;;  %v1877_v43 = vadd.f32 %v3358_v26, %v1865_v36 }
 0x144   : > { %v1446_v41 = vadd.f32 %v1436_v10, %v1311_v40  ;;  %v1885_v48 = vmax.f32 %v1877_v43, 0.0 }
 0x146   : > { %v1692_v14 = vadd.f32 %v1682_v27, %v1446_v41 }
 0x148   : > { %v1866_v11 = vadd.f32 %v1856_v38, %v1692_v14 }
 0x14a   : > { %v1878_v21 = vadd.f32 %v3358_v26, %v1866_v11 }
 0x14c   : > { %v1886_v50 = vmax.f32 %v1878_v21, 0.0 }
 0x14e   : > { %v2675_v51 = vpack.c.bf16 %v1886_v50, %v1885_v48 }
 0x150   : > { %2679 = vst [vmem:[%s3367_s9 + $0x18] sm:$0xff] %v2675_v51  }
 0x151 PF: > { %s13_s14 = sadd.s32 1, %s2744_s14   ;;  %s3405_s12 = smov %s2740_s13 }
 0x152   : > { %p10_p5 = scmp.ge.s32.totalorder %s13_s14, 4   ;;  %s3406_s13 = smov %s3408_s15 }
 0x154   :  { %12 = sbr.rel (!%p10_p5) target bundleno = 2 (0x2), region = 78 }

</bundles_post_ra>
